<compile_context>
chip_gen: v6e
topology: v6e:2x2x1
jax: 0.10.0
libtpu: 0.0.40
codegen_flags: <defaults>
</compile_context>

<pallas_src>
import functools

import jax
import jax.numpy as jnp
from jax import lax
from jax.experimental import pallas as pl
from jax.experimental.pallas import tpu as pltpu


# ----------------------------- Pallas kernel --------------------------------

def _layernorm(v, g_ref, b_ref, eps=1e-6):
    # FP32_Layernorm: mean / biased var over last dim, f32 affine.
    mu = jnp.mean(v, axis=-1, keepdims=True)
    var = jnp.mean((v - mu) ** 2, axis=-1, keepdims=True)
    return (v - mu) * lax.rsqrt(var + eps) * g_ref[...] + b_ref[...]


def _gelu_tanh(v):
    # nn.GELU(approximate='tanh')
    return 0.5 * v * (1.0 + jnp.tanh(0.7978845608028654 * (v + 0.044715 * v * v * v)))


def dit_block_kernel(
    x_ref, shift_ref, y_ref,
    n1g, n1b, n2g, n2b, n3g, n3b,
    w_q1, b_q1, w_kv1, b_kv1, w_o1, b_o1,
    w_q2, b_q2, w_kv2, b_kv2, w_o2, b_o2,
    w_m1, b_m1, w_m2, b_m2,
    o_ref,
    kv1_s, kv2_s,
    *, num_heads, q_tile, mlp_chunk,
):
    f32, bf16 = jnp.float32, jnp.bfloat16
    qi = pl.program_id(1)

    D = o_ref.shape[-1]
    TQ = q_tile
    H = num_heads
    dh = D // H

    shift = shift_ref[0].astype(f32)      # (1, D) precomputed modulation shift

    # ---- per-batch K/V projections, cached in VMEM scratch (qi == 0 only) ---
    @pl.when(qi == 0)
    def _():
        x_kv = x_ref[0].astype(f32)                                 # (S, D)
        h1_kv = (_layernorm(x_kv, n1g, n1b) + shift).astype(bf16)
        kv1 = jnp.dot(h1_kv, w_kv1[...], preferred_element_type=f32) + b_kv1[...]
        kv1_s[...] = kv1.astype(bf16)
        kv2 = jnp.dot(y_ref[0], w_kv2[...], preferred_element_type=f32) + b_kv2[...]
        kv2_s[...] = kv2.astype(bf16)

    # ---- query tile of the residual stream (zero-cost ref view + ds) --------
    q_off = pl.multiple_of(qi * TQ, TQ)
    x = x_ref.at[0][pl.ds(q_off, TQ), :].astype(f32)                # (TQ, D)

    def split_heads(t):
        # (L, D) bf16 -> (H, L, dh) bf16, heads as the leading batch dim.
        return jnp.stack([t[:, h * dh:(h + 1) * dh] for h in range(H)], axis=0)

    def mha(q_f32, kv_bf16):
        # Batched multi-head attention; 1/sqrt(dh) already folded into q proj.
        qh = split_heads(q_f32.astype(bf16))
        kh = split_heads(kv_bf16[:, :D])
        vh = split_heads(kv_bf16[:, D:])
        s = jnp.einsum('hqd,hkd->hqk', qh, kh, preferred_element_type=f32)
        s = s - jnp.max(s, axis=-1, keepdims=True)
        p = jnp.exp(s)
        p = p * pl.reciprocal(jnp.sum(p, axis=-1, keepdims=True), approx=True)
        o = jnp.einsum('hqk,hkd->hqd', p.astype(bf16), vh,
                       preferred_element_type=f32)
        return jnp.concatenate([o[h] for h in range(H)], axis=-1)   # (Lq, D) f32

    # --- self attention: x = x + attn1(norm1(x) + shift_msa) -----------------
    # TODO(synk): for very long sequences the (H, TQ, S) score matrix should be
    # replaced by an online-softmax loop over K/V blocks (flash-style).
    h1_q = (_layernorm(x, n1g, n1b) + shift).astype(bf16)
    q1 = jnp.dot(h1_q, w_q1[...], preferred_element_type=f32) + b_q1[...]
    a1 = mha(q1, kv1_s[...])
    x = x + jnp.dot(a1.astype(bf16), w_o1[...], preferred_element_type=f32) + b_o1[...]

    # --- cross attention: x = x + attn2(norm3(x), y) -------------------------
    h3 = _layernorm(x, n3g, n3b).astype(bf16)
    q2 = jnp.dot(h3, w_q2[...], preferred_element_type=f32) + b_q2[...]
    a2 = mha(q2, kv2_s[...])
    x = x + jnp.dot(a2.astype(bf16), w_o2[...], preferred_element_type=f32) + b_o2[...]

    # --- MLP: x = x + mlp(norm2(x)), hidden dim processed in chunks ----------
    h2 = _layernorm(x, n2g, n2b).astype(bf16)
    n_chunks = w_m1.shape[1] // mlp_chunk

    def mlp_body(ci, acc):
        off = pl.multiple_of(ci * mlp_chunk, mlp_chunk)
        hh = jnp.dot(h2, w_m1[:, pl.ds(off, mlp_chunk)], preferred_element_type=f32)
        hh = _gelu_tanh(hh + b_m1[:, pl.ds(off, mlp_chunk)]).astype(bf16)
        return acc + jnp.dot(hh, w_m2[pl.ds(off, mlp_chunk), :],
                             preferred_element_type=f32)

    m = lax.fori_loop(0, n_chunks, mlp_body, jnp.zeros((TQ, D), f32), unroll=True)
    x = x + m + b_m2[...]

    o_ref[0] = x.astype(o_ref.dtype)


# ------------------------------- wrapper -------------------------------------

def dit_block(x, c, y, params, *, num_heads, q_tile=128, mlp_chunk=512):
    f32, bf16 = jnp.float32, jnp.bfloat16
    B, S, D = x.shape
    Sy = y.shape[1]
    dh = D // num_heads
    scale = float(dh) ** -0.5

    # Query-tile / MLP-chunk sizes (fall back to full extent at small shapes).
    TQ = q_tile if (S % q_tile == 0 and S > q_tile) else S
    NQ = S // TQ
    mlp_hidden = params["w_m1"].shape[1]
    MC = mlp_chunk if (mlp_hidden % mlp_chunk == 0 and mlp_hidden > mlp_chunk) else mlp_hidden

    # default_modulation hoisted out of the kernel (tiny M=1 GEMM, done once in f32).
    shift_msa = (jax.nn.silu(c.astype(f32)) @ params["w_mod"].astype(f32)
                 + params["b_mod"].astype(f32)).reshape(B, 1, D)

    # Split fused qkv, fold the attention scale into the q projections at trace
    # time, and store all matmul weights as bf16 (f32 accumulation on the MXU).
    w_qkv = params["w_qkv"].astype(f32)
    b_qkv = params["b_qkv"].astype(f32)
    weights = [
        params["n1g"].astype(f32), params["n1b"].astype(f32),
        params["n2g"].astype(f32), params["n2b"].astype(f32),
        params["n3g"].astype(f32), params["n3b"].astype(f32),
        (w_qkv[:, :D] * scale).astype(bf16), b_qkv[:, :D] * scale,
        w_qkv[:, D:].astype(bf16), b_qkv[:, D:],
        params["w_o1"].astype(bf16), params["b_o1"].astype(f32),
        (params["w_q2"].astype(f32) * scale).astype(bf16),
        params["b_q2"].astype(f32) * scale,
        params["w_kv2"].astype(bf16), params["b_kv2"].astype(f32),
        params["w_o2"].astype(bf16), params["b_o2"].astype(f32),
        params["w_m1"].astype(bf16), params["b_m1"].astype(f32),
        params["w_m2"].astype(bf16), params["b_m2"].astype(f32),
    ]

    in_specs = [
        pl.BlockSpec((1, S, D), lambda b, qi: (b, 0, 0)),     # x, full sequence
        pl.BlockSpec((1, 1, D), lambda b, qi: (b, 0, 0)),     # shift_msa
        pl.BlockSpec((1, Sy, D), lambda b, qi: (b, 0, 0)),    # y (bf16)
    ] + [pl.BlockSpec(w.shape, lambda b, qi: (0, 0)) for w in weights]

    # Advisory cost estimate so XLA can schedule around the fused kernel.
    flops = 2 * B * (
        S * D * (3 * D)                 # fused qkv projection
        + 2 * S * S * D                 # self-attn scores + values
        + S * D * D                     # self-attn out proj
        + S * D * D                     # cross-attn q proj
        + Sy * D * (2 * D)              # cross-attn kv proj
        + 2 * S * Sy * D                # cross-attn scores + values
        + S * D * D                     # cross-attn out proj
        + 2 * S * D * mlp_hidden)       # mlp
    transcendentals = B * (num_heads * S * (S + Sy) + S * mlp_hidden)
    bytes_accessed = int(2 * x.size * x.dtype.itemsize + y.size * 2
                         + shift_msa.size * 4
                         + sum(int(w.size) * w.dtype.itemsize for w in weights))

    kernel = functools.partial(dit_block_kernel, num_heads=num_heads,
                               q_tile=TQ, mlp_chunk=MC)

    return pl.pallas_call(
        kernel,
        out_shape=jax.ShapeDtypeStruct((B, S, D), x.dtype),
        grid=(B, NQ),
        in_specs=in_specs,
        out_specs=pl.BlockSpec((1, TQ, D), lambda b, qi: (b, qi, 0)),
        scratch_shapes=[
            pltpu.VMEM((S, 2 * D), bf16),    # cached self-attn K/V (per batch)
            pltpu.VMEM((Sy, 2 * D), bf16),   # cached cross-attn K/V (per batch)
        ],
        compiler_params=pltpu.CompilerParams(
            # K/V scratch is written at qi == 0 and reused across query tiles,
            # so the query-tile axis must stay sequential on one core.
            dimension_semantics=("parallel", "arbitrary"),
            vmem_limit_bytes=48 * 1024 * 1024,
        ),
        cost_estimate=pl.CostEstimate(
            flops=int(flops),
            transcendentals=int(transcendentals),
            bytes_accessed=bytes_accessed,
        ),
    )(x, shift_msa, y.astype(bf16), *weights)


# --------------------------- pure-JAX reference (f32) -------------------------

def dit_block_ref(x, c, y, p, *, num_heads):
    def ln(v, g, b, eps=1e-6):
        mu = jnp.mean(v, axis=-1, keepdims=True)
        var = jnp.mean((v - mu) ** 2, axis=-1, keepdims=True)
        return (v - mu) / jnp.sqrt(var + eps) * g[0] + b[0]

    def gelu(v):
        return 0.5 * v * (1.0 + jnp.tanh(0.7978845608028654 * (v + 0.044715 * v ** 3)))

    def mha(q, k, v):
        B, Sq, D = q.shape
        Sk = k.shape[1]
        dh = D // num_heads
        qh = q.reshape(B, Sq, num_heads, dh)
        kh = k.reshape(B, Sk, num_heads, dh)
        vh = v.reshape(B, Sk, num_heads, dh)
        s = jnp.einsum("bqhd,bkhd->bhqk", qh, kh) * (dh ** -0.5)
        pz = jax.nn.softmax(s, axis=-1)
        o = jnp.einsum("bhqk,bkhd->bqhd", pz, vh)
        return o.reshape(B, Sq, D)

    shift = (jax.nn.silu(c) @ p["w_mod"] + p["b_mod"][0])[:, None, :]
    h1 = ln(x, p["n1g"], p["n1b"]) + shift
    qkv = h1 @ p["w_qkv"] + p["b_qkv"][0]
    D = x.shape[-1]
    q, k, v = qkv[..., :D], qkv[..., D:2 * D], qkv[..., 2 * D:]
    x = x + (mha(q, k, v) @ p["w_o1"] + p["b_o1"][0])

    h3 = ln(x, p["n3g"], p["n3b"])
    q2 = h3 @ p["w_q2"] + p["b_q2"][0]
    kv2 = y @ p["w_kv2"] + p["b_kv2"][0]
    k2, v2 = kv2[..., :D], kv2[..., D:]
    x = x + (mha(q2, k2, v2) @ p["w_o2"] + p["b_o2"][0])

    h2 = ln(x, p["n2g"], p["n2b"])
    m = gelu(h2 @ p["w_m1"] + p["b_m1"][0]) @ p["w_m2"] + p["b_m2"][0]
    return x + m


# --------------------------------- main ---------------------------------------

if __name__ == "__main__":
    B, S, Sy = 2, 8, 8
    hidden = 32
    c_emb = 16
    num_heads = 4
    mlp_hidden = int(hidden * 4.0)

    key = jax.random.PRNGKey(0)
    keys = jax.random.split(key, 32)
    ki = iter(range(32))

    def w(shape, scale=0.02):
        return (scale * jax.random.normal(keys[next(ki)], shape)).astype(jnp.float32)

    params = {
        # LayerNorm affine params, stored as (1, D) rows
        "n1g": 1.0 + w((1, hidden), 0.1), "n1b": w((1, hidden), 0.1),
        "n2g": 1.0 + w((1, hidden), 0.1), "n2b": w((1, hidden), 0.1),
        "n3g": 1.0 + w((1, hidden), 0.1), "n3b": w((1, hidden), 0.1),
        # self-attention (qkv fused, out proj), weights are (in, out)
        "w_qkv": w((hidden, 3 * hidden)), "b_qkv": w((1, 3 * hidden)),
        "w_o1": w((hidden, hidden)), "b_o1": w((1, hidden)),
        # cross-attention (q from x, kv from y, out proj)
        "w_q2": w((hidden, hidden)), "b_q2": w((1, hidden)),
        "w_kv2": w((hidden, 2 * hidden)), "b_kv2": w((1, 2 * hidden)),
        "w_o2": w((hidden, hidden)), "b_o2": w((1, hidden)),
        # MLP
        "w_m1": w((hidden, mlp_hidden)), "b_m1": w((1, mlp_hidden)),
        "w_m2": w((mlp_hidden, hidden)), "b_m2": w((1, hidden)),
        # default_modulation linear
        "w_mod": w((c_emb, hidden)), "b_mod": w((1, hidden)),
    }

    kx, kc, ky = jax.random.split(jax.random.PRNGKey(1), 3)
    x = jax.random.normal(kx, (B, S, hidden), dtype=jnp.float32)
    c = jax.random.normal(kc, (B, c_emb), dtype=jnp.float32)
    y = jax.random.normal(ky, (B, Sy, hidden), dtype=jnp.float32)

    out = dit_block(x, c, y, params, num_heads=num_heads)
    out = jax.block_until_ready(out)

    ref = dit_block_ref(x, c, y, params, num_heads=num_heads)
    assert out.shape == (B, S, hidden)
    # bf16 matmul operands (f32 accumulation) vs f32 reference -> looser tolerance.
    assert jnp.allclose(out, ref, atol=2e-2, rtol=2e-2), "mismatch vs JAX reference"

    print("KERNEL_OK")
</pallas_src>

<mosaic_0001>
module attributes {stable_mosaic.version = 11 : i64} {
  func.func @dit_block_kernel(%arg0: i32, %arg1: i32, %arg2: memref<1x8x32xf32, #tpu.memory_space<vmem>>, %arg3: memref<1x1x32xf32, #tpu.memory_space<vmem>>, %arg4: memref<1x8x32xbf16, #tpu.memory_space<vmem>>, %arg5: memref<1x32xf32, #tpu.memory_space<vmem>>, %arg6: memref<1x32xf32, #tpu.memory_space<vmem>>, %arg7: memref<1x32xf32, #tpu.memory_space<vmem>>, %arg8: memref<1x32xf32, #tpu.memory_space<vmem>>, %arg9: memref<1x32xf32, #tpu.memory_space<vmem>>, %arg10: memref<1x32xf32, #tpu.memory_space<vmem>>, %arg11: memref<32x32xbf16, #tpu.memory_space<vmem>>, %arg12: memref<1x32xf32, #tpu.memory_space<vmem>>, %arg13: memref<32x64xbf16, #tpu.memory_space<vmem>>, %arg14: memref<1x64xf32, #tpu.memory_space<vmem>>, %arg15: memref<32x32xbf16, #tpu.memory_space<vmem>>, %arg16: memref<1x32xf32, #tpu.memory_space<vmem>>, %arg17: memref<32x32xbf16, #tpu.memory_space<vmem>>, %arg18: memref<1x32xf32, #tpu.memory_space<vmem>>, %arg19: memref<32x64xbf16, #tpu.memory_space<vmem>>, %arg20: memref<1x64xf32, #tpu.memory_space<vmem>>, %arg21: memref<32x32xbf16, #tpu.memory_space<vmem>>, %arg22: memref<1x32xf32, #tpu.memory_space<vmem>>, %arg23: memref<32x128xbf16, #tpu.memory_space<vmem>>, %arg24: memref<1x128xf32, #tpu.memory_space<vmem>>, %arg25: memref<128x32xbf16, #tpu.memory_space<vmem>>, %arg26: memref<1x32xf32, #tpu.memory_space<vmem>>, %arg27: memref<1x8x32xf32, #tpu.memory_space<vmem>>, %arg28: memref<8x64xbf16, #tpu.memory_space<vmem>>, %arg29: memref<8x64xbf16, #tpu.memory_space<vmem>>) attributes {dimension_semantics = [#tpu.dimension_semantics<parallel>, #tpu.dimension_semantics<arbitrary>], iteration_bounds = array<i64: 2, 1>, scalar_prefetch = 0 : i64, scratch_operands = 2 : i64, tpu.core_type = #tpu.core_type<tc>, window_params = [{transform_indices = @transform_0, window_bounds = array<i64: 1, 8, 32>}, {transform_indices = @transform_1, window_bounds = array<i64: 1, 1, 32>}, {transform_indices = @transform_2, window_bounds = array<i64: 1, 8, 32>}, {pipeline_mode = #tpu.pipeline_mode<synchronous>, transform_indices = @transform_3, window_bounds = array<i64: 1, 32>}, {pipeline_mode = #tpu.pipeline_mode<synchronous>, transform_indices = @transform_4, window_bounds = array<i64: 1, 32>}, {pipeline_mode = #tpu.pipeline_mode<synchronous>, transform_indices = @transform_5, window_bounds = array<i64: 1, 32>}, {pipeline_mode = #tpu.pipeline_mode<synchronous>, transform_indices = @transform_6, window_bounds = array<i64: 1, 32>}, {pipeline_mode = #tpu.pipeline_mode<synchronous>, transform_indices = @transform_7, window_bounds = array<i64: 1, 32>}, {pipeline_mode = #tpu.pipeline_mode<synchronous>, transform_indices = @transform_8, window_bounds = array<i64: 1, 32>}, {pipeline_mode = #tpu.pipeline_mode<synchronous>, transform_indices = @transform_9, window_bounds = array<i64: 32, 32>}, {pipeline_mode = #tpu.pipeline_mode<synchronous>, transform_indices = @transform_10, window_bounds = array<i64: 1, 32>}, {pipeline_mode = #tpu.pipeline_mode<synchronous>, transform_indices = @transform_11, window_bounds = array<i64: 32, 64>}, {pipeline_mode = #tpu.pipeline_mode<synchronous>, transform_indices = @transform_12, window_bounds = array<i64: 1, 64>}, {pipeline_mode = #tpu.pipeline_mode<synchronous>, transform_indices = @transform_13, window_bounds = array<i64: 32, 32>}, {pipeline_mode = #tpu.pipeline_mode<synchronous>, transform_indices = @transform_14, window_bounds = array<i64: 1, 32>}, {pipeline_mode = #tpu.pipeline_mode<synchronous>, transform_indices = @transform_15, window_bounds = array<i64: 32, 32>}, {pipeline_mode = #tpu.pipeline_mode<synchronous>, transform_indices = @transform_16, window_bounds = array<i64: 1, 32>}, {pipeline_mode = #tpu.pipeline_mode<synchronous>, transform_indices = @transform_17, window_bounds = array<i64: 32, 64>}, {pipeline_mode = #tpu.pipeline_mode<synchronous>, transform_indices = @transform_18, window_bounds = array<i64: 1, 64>}, {pipeline_mode = #tpu.pipeline_mode<synchronous>, transform_indices = @transform_19, window_bounds = array<i64: 32, 32>}, {pipeline_mode = #tpu.pipeline_mode<synchronous>, transform_indices = @transform_20, window_bounds = array<i64: 1, 32>}, {pipeline_mode = #tpu.pipeline_mode<synchronous>, transform_indices = @transform_21, window_bounds = array<i64: 32, 128>}, {pipeline_mode = #tpu.pipeline_mode<synchronous>, transform_indices = @transform_22, window_bounds = array<i64: 1, 128>}, {pipeline_mode = #tpu.pipeline_mode<synchronous>, transform_indices = @transform_23, window_bounds = array<i64: 128, 32>}, {pipeline_mode = #tpu.pipeline_mode<synchronous>, transform_indices = @transform_24, window_bounds = array<i64: 1, 32>}, {transform_indices = @transform_25, window_bounds = array<i64: 1, 8, 32>}]} {
    %c0 = arith.constant 0 : index
    %c0_0 = arith.constant 0 : index
    %c0_1 = arith.constant 0 : index
    %0 = vector.load %arg3[%c0, %c0_0, %c0_1] : memref<1x1x32xf32, #tpu.memory_space<vmem>>, vector<1x1x32xf32>
    %1 = vector.shape_cast %0 : vector<1x1x32xf32> to vector<1x32xf32>
    %c0_i32 = arith.constant 0 : i32
    %2 = arith.cmpi eq, %arg1, %c0_i32 : i32
    %3 = arith.extui %2 : i1 to i32
    %c0_i32_2 = arith.constant 0 : i32
    %4 = arith.cmpi ne, %3, %c0_i32_2 : i32
    scf.if %4 {
      %c0_81 = arith.constant 0 : index
      %c0_82 = arith.constant 0 : index
      %c0_83 = arith.constant 0 : index
      %253 = vector.load %arg2[%c0_81, %c0_82, %c0_83] : memref<1x8x32xf32, #tpu.memory_space<vmem>>, vector<1x8x32xf32>
      %254 = vector.shape_cast %253 : vector<1x8x32xf32> to vector<8x32xf32>
      %cst_84 = arith.constant dense<0.000000e+00> : vector<8xf32>
      %255 = vector.multi_reduction <add>, %254, %cst_84 [1] : vector<8x32xf32> to vector<8xf32>
      %256 = vector.shape_cast %255 : vector<8xf32> to vector<8x1xf32>
      %cst_85 = arith.constant 3.200000e+01 : f32
      %257 = vector.broadcast %cst_85 : f32 to vector<8x1xf32>
      %258 = arith.divf %256, %257 : vector<8x1xf32>
      %259 = vector.broadcast %258 : vector<8x1xf32> to vector<8x32xf32>
      %260 = arith.subf %254, %259 : vector<8x32xf32>
      %261 = arith.mulf %260, %260 : vector<8x32xf32>
      %cst_86 = arith.constant dense<0.000000e+00> : vector<8xf32>
      %262 = vector.multi_reduction <add>, %261, %cst_86 [1] : vector<8x32xf32> to vector<8xf32>
      %263 = vector.shape_cast %262 : vector<8xf32> to vector<8x1xf32>
      %cst_87 = arith.constant 3.200000e+01 : f32
      %264 = vector.broadcast %cst_87 : f32 to vector<8x1xf32>
      %265 = arith.divf %263, %264 : vector<8x1xf32>
      %266 = vector.broadcast %258 : vector<8x1xf32> to vector<8x32xf32>
      %267 = arith.subf %254, %266 : vector<8x32xf32>
      %cst_88 = arith.constant 9.99999997E-7 : f32
      %268 = vector.broadcast %cst_88 : f32 to vector<8x1xf32>
      %269 = arith.addf %265, %268 : vector<8x1xf32>
      %270 = math.rsqrt %269 : vector<8x1xf32>
      %271 = vector.broadcast %270 : vector<8x1xf32> to vector<8x32xf32>
      %272 = arith.mulf %267, %271 : vector<8x32xf32>
      %c0_89 = arith.constant 0 : index
      %c0_90 = arith.constant 0 : index
      %273 = vector.load %arg5[%c0_89, %c0_90] : memref<1x32xf32, #tpu.memory_space<vmem>>, vector<1x32xf32>
      %274 = vector.broadcast %273 : vector<1x32xf32> to vector<8x32xf32>
      %275 = arith.mulf %272, %274 : vector<8x32xf32>
      %c0_91 = arith.constant 0 : index
      %c0_92 = arith.constant 0 : index
      %276 = vector.load %arg6[%c0_91, %c0_92] : memref<1x32xf32, #tpu.memory_space<vmem>>, vector<1x32xf32>
      %277 = vector.broadcast %276 : vector<1x32xf32> to vector<8x32xf32>
      %278 = arith.addf %275, %277 : vector<8x32xf32>
      %279 = vector.broadcast %1 : vector<1x32xf32> to vector<8x32xf32>
      %280 = arith.addf %278, %279 : vector<8x32xf32>
      %281 = arith.truncf %280 : vector<8x32xf32> to vector<8x32xbf16>
      %c0_93 = arith.constant 0 : index
      %c0_94 = arith.constant 0 : index
      %282 = vector.load %arg13[%c0_93, %c0_94] : memref<32x64xbf16, #tpu.memory_space<vmem>>, vector<32x64xbf16>
      %cst_95 = arith.constant dense<0.000000e+00> : vector<8x64xf32>
      %283 = tpu.matmul %281, %282, %cst_95 {dimension_numbers = #tpu.dot_dimension_numbers<[1], [0], [0], [1], [0, 0, 1, 1], [], []>} : vector<8x32xbf16>, vector<32x64xbf16>, vector<8x64xf32> -> vector<8x64xf32>
      %c0_96 = arith.constant 0 : index
      %c0_97 = arith.constant 0 : index
      %284 = vector.load %arg14[%c0_96, %c0_97] : memref<1x64xf32, #tpu.memory_space<vmem>>, vector<1x64xf32>
      %285 = vector.broadcast %284 : vector<1x64xf32> to vector<8x64xf32>
      %286 = arith.addf %283, %285 : vector<8x64xf32>
      %287 = arith.truncf %286 : vector<8x64xf32> to vector<8x64xbf16>
      %c0_98 = arith.constant 0 : index
      %c0_99 = arith.constant 0 : index
      %288 = vector.load %arg28[%c0_98, %c0_99] : memref<8x64xbf16, #tpu.memory_space<vmem>>, vector<8x64xbf16>
      tpu.vector_store %arg28[%c0_98, %c0_99], %287 {strides = array<i32>} : memref<8x64xbf16, #tpu.memory_space<vmem>>, vector<8x64xbf16>,
      %c0_100 = arith.constant 0 : index
      %c0_101 = arith.constant 0 : index
      %c0_102 = arith.constant 0 : index
      %289 = vector.load %arg4[%c0_100, %c0_101, %c0_102] : memref<1x8x32xbf16, #tpu.memory_space<vmem>>, vector<1x8x32xbf16>
      %290 = vector.shape_cast %289 : vector<1x8x32xbf16> to vector<8x32xbf16>
      %c0_103 = arith.constant 0 : index
      %c0_104 = arith.constant 0 : index
      %291 = vector.load %arg19[%c0_103, %c0_104] : memref<32x64xbf16, #tpu.memory_space<vmem>>, vector<32x64xbf16>
      %cst_105 = arith.constant dense<0.000000e+00> : vector<8x64xf32>
      %292 = tpu.matmul %290, %291, %cst_105 {dimension_numbers = #tpu.dot_dimension_numbers<[1], [0], [0], [1], [0, 0, 1, 1], [], []>} : vector<8x32xbf16>, vector<32x64xbf16>, vector<8x64xf32> -> vector<8x64xf32>
      %c0_106 = arith.constant 0 : index
      %c0_107 = arith.constant 0 : index
      %293 = vector.load %arg20[%c0_106, %c0_107] : memref<1x64xf32, #tpu.memory_space<vmem>>, vector<1x64xf32>
      %294 = vector.broadcast %293 : vector<1x64xf32> to vector<8x64xf32>
      %295 = arith.addf %292, %294 : vector<8x64xf32>
      %296 = arith.truncf %295 : vector<8x64xf32> to vector<8x64xbf16>
      %c0_108 = arith.constant 0 : index
      %c0_109 = arith.constant 0 : index
      %297 = vector.load %arg29[%c0_108, %c0_109] : memref<8x64xbf16, #tpu.memory_space<vmem>>, vector<8x64xbf16>
      tpu.vector_store %arg29[%c0_108, %c0_109], %296 {strides = array<i32>} : memref<8x64xbf16, #tpu.memory_space<vmem>>, vector<8x64xbf16>,
    } else {
    }
    %c8_i32 = arith.constant 8 : i32
    %5 = arith.muli %arg1, %c8_i32 : i32
    %6 = tpu.assume_multiple %5, 8 : i32
    %c0_i32_3 = arith.constant 0 : i32
    %c0_i32_4 = arith.constant 0 : i32
    %c0_i32_5 = arith.constant 0 : i32
    %7 = tpu.memref_slice %arg2[%c0_i32_3, %c0_i32_4, %c0_i32_5] : memref<1x8x32xf32, #tpu.memory_space<vmem>> -> memref<1x8x32xf32, #tpu.memory_space<vmem>>
    %8 = tpu.memref_squeeze %7 : memref<1x8x32xf32, #tpu.memory_space<vmem>> -> memref<8x32xf32, #tpu.memory_space<vmem>>
    %9 = arith.index_cast %6 : i32 to index
    %c0_6 = arith.constant 0 : index
    %10 = vector.load %8[%9, %c0_6] : memref<8x32xf32, #tpu.memory_space<vmem>>, vector<8x32xf32>
    %cst = arith.constant dense<0.000000e+00> : vector<8xf32>
    %11 = vector.multi_reduction <add>, %10, %cst [1] : vector<8x32xf32> to vector<8xf32>
    %12 = vector.shape_cast %11 : vector<8xf32> to vector<8x1xf32>
    %cst_7 = arith.constant 3.200000e+01 : f32
    %13 = vector.broadcast %cst_7 : f32 to vector<8x1xf32>
    %14 = arith.divf %12, %13 : vector<8x1xf32>
    %15 = vector.broadcast %14 : vector<8x1xf32> to vector<8x32xf32>
    %16 = arith.subf %10, %15 : vector<8x32xf32>
    %17 = arith.mulf %16, %16 : vector<8x32xf32>
    %cst_8 = arith.constant dense<0.000000e+00> : vector<8xf32>
    %18 = vector.multi_reduction <add>, %17, %cst_8 [1] : vector<8x32xf32> to vector<8xf32>
    %19 = vector.shape_cast %18 : vector<8xf32> to vector<8x1xf32>
    %cst_9 = arith.constant 3.200000e+01 : f32
    %20 = vector.broadcast %cst_9 : f32 to vector<8x1xf32>
    %21 = arith.divf %19, %20 : vector<8x1xf32>
    %22 = vector.broadcast %14 : vector<8x1xf32> to vector<8x32xf32>
    %23 = arith.subf %10, %22 : vector<8x32xf32>
    %cst_10 = arith.constant 9.99999997E-7 : f32
    %24 = vector.broadcast %cst_10 : f32 to vector<8x1xf32>
    %25 = arith.addf %21, %24 : vector<8x1xf32>
    %26 = math.rsqrt %25 : vector<8x1xf32>
    %27 = vector.broadcast %26 : vector<8x1xf32> to vector<8x32xf32>
    %28 = arith.mulf %23, %27 : vector<8x32xf32>
    %c0_11 = arith.constant 0 : index
    %c0_12 = arith.constant 0 : index
    %29 = vector.load %arg5[%c0_11, %c0_12] : memref<1x32xf32, #tpu.memory_space<vmem>>, vector<1x32xf32>
    %30 = vector.broadcast %29 : vector<1x32xf32> to vector<8x32xf32>
    %31 = arith.mulf %28, %30 : vector<8x32xf32>
    %c0_13 = arith.constant 0 : index
    %c0_14 = arith.constant 0 : index
    %32 = vector.load %arg6[%c0_13, %c0_14] : memref<1x32xf32, #tpu.memory_space<vmem>>, vector<1x32xf32>
    %33 = vector.broadcast %32 : vector<1x32xf32> to vector<8x32xf32>
    %34 = arith.addf %31, %33 : vector<8x32xf32>
    %35 = vector.broadcast %1 : vector<1x32xf32> to vector<8x32xf32>
    %36 = arith.addf %34, %35 : vector<8x32xf32>
    %37 = arith.truncf %36 : vector<8x32xf32> to vector<8x32xbf16>
    %c0_15 = arith.constant 0 : index
    %c0_16 = arith.constant 0 : index
    %38 = vector.load %arg11[%c0_15, %c0_16] : memref<32x32xbf16, #tpu.memory_space<vmem>>, vector<32x32xbf16>
    %cst_17 = arith.constant dense<0.000000e+00> : vector<8x32xf32>
    %39 = tpu.matmul %37, %38, %cst_17 {dimension_numbers = #tpu.dot_dimension_numbers<[1], [0], [0], [1], [0, 0, 1, 1], [], []>} : vector<8x32xbf16>, vector<32x32xbf16>, vector<8x32xf32> -> vector<8x32xf32>
    %c0_18 = arith.constant 0 : index
    %c0_19 = arith.constant 0 : index
    %40 = vector.load %arg12[%c0_18, %c0_19] : memref<1x32xf32, #tpu.memory_space<vmem>>, vector<1x32xf32>
    %41 = vector.broadcast %40 : vector<1x32xf32> to vector<8x32xf32>
    %42 = arith.addf %39, %41 : vector<8x32xf32>
    %c0_20 = arith.constant 0 : index
    %c0_21 = arith.constant 0 : index
    %43 = vector.load %arg28[%c0_20, %c0_21] : memref<8x64xbf16, #tpu.memory_space<vmem>>, vector<8x64xbf16>
    %44 = arith.truncf %42 : vector<8x32xf32> to vector<8x32xbf16>
    %45 = vector.extract_strided_slice %44 {offsets = [0, 0], sizes = [8, 8], strides = [1, 1]} : vector<8x32xbf16> to vector<8x8xbf16>
    %46 = vector.extract_strided_slice %44 {offsets = [0, 8], sizes = [8, 8], strides = [1, 1]} : vector<8x32xbf16> to vector<8x8xbf16>
    %47 = vector.extract_strided_slice %44 {offsets = [0, 16], sizes = [8, 8], strides = [1, 1]} : vector<8x32xbf16> to vector<8x8xbf16>
    %48 = vector.extract_strided_slice %44 {offsets = [0, 24], sizes = [8, 8], strides = [1, 1]} : vector<8x32xbf16> to vector<8x8xbf16>
    %49 = vector.shape_cast %45 : vector<8x8xbf16> to vector<1x8x8xbf16>
    %50 = vector.shape_cast %46 : vector<8x8xbf16> to vector<1x8x8xbf16>
    %51 = vector.shape_cast %47 : vector<8x8xbf16> to vector<1x8x8xbf16>
    %52 = vector.shape_cast %48 : vector<8x8xbf16> to vector<1x8x8xbf16>
    %53 = tpu.concatenate %49, %50, %51, %52 in 0 : vector<1x8x8xbf16>, vector<1x8x8xbf16>, vector<1x8x8xbf16>, vector<1x8x8xbf16> -> vector<4x8x8xbf16>
    %54 = vector.extract_strided_slice %43 {offsets = [0, 0], sizes = [8, 32], strides = [1, 1]} : vector<8x64xbf16> to vector<8x32xbf16>
    %55 = vector.extract_strided_slice %54 {offsets = [0, 0], sizes = [8, 8], strides = [1, 1]} : vector<8x32xbf16> to vector<8x8xbf16>
    %56 = vector.extract_strided_slice %54 {offsets = [0, 8], sizes = [8, 8], strides = [1, 1]} : vector<8x32xbf16> to vector<8x8xbf16>
    %57 = vector.extract_strided_slice %54 {offsets = [0, 16], sizes = [8, 8], strides = [1, 1]} : vector<8x32xbf16> to vector<8x8xbf16>
    %58 = vector.extract_strided_slice %54 {offsets = [0, 24], sizes = [8, 8], strides = [1, 1]} : vector<8x32xbf16> to vector<8x8xbf16>
    %59 = vector.shape_cast %55 : vector<8x8xbf16> to vector<1x8x8xbf16>
    %60 = vector.shape_cast %56 : vector<8x8xbf16> to vector<1x8x8xbf16>
    %61 = vector.shape_cast %57 : vector<8x8xbf16> to vector<1x8x8xbf16>
    %62 = vector.shape_cast %58 : vector<8x8xbf16> to vector<1x8x8xbf16>
    %63 = tpu.concatenate %59, %60, %61, %62 in 0 : vector<1x8x8xbf16>, vector<1x8x8xbf16>, vector<1x8x8xbf16>, vector<1x8x8xbf16> -> vector<4x8x8xbf16>
    %64 = vector.extract_strided_slice %43 {offsets = [0, 32], sizes = [8, 32], strides = [1, 1]} : vector<8x64xbf16> to vector<8x32xbf16>
    %65 = vector.extract_strided_slice %64 {offsets = [0, 0], sizes = [8, 8], strides = [1, 1]} : vector<8x32xbf16> to vector<8x8xbf16>
    %66 = vector.extract_strided_slice %64 {offsets = [0, 8], sizes = [8, 8], strides = [1, 1]} : vector<8x32xbf16> to vector<8x8xbf16>
    %67 = vector.extract_strided_slice %64 {offsets = [0, 16], sizes = [8, 8], strides = [1, 1]} : vector<8x32xbf16> to vector<8x8xbf16>
    %68 = vector.extract_strided_slice %64 {offsets = [0, 24], sizes = [8, 8], strides = [1, 1]} : vector<8x32xbf16> to vector<8x8xbf16>
    %69 = vector.shape_cast %65 : vector<8x8xbf16> to vector<1x8x8xbf16>
    %70 = vector.shape_cast %66 : vector<8x8xbf16> to vector<1x8x8xbf16>
    %71 = vector.shape_cast %67 : vector<8x8xbf16> to vector<1x8x8xbf16>
    %72 = vector.shape_cast %68 : vector<8x8xbf16> to vector<1x8x8xbf16>
    %73 = tpu.concatenate %69, %70, %71, %72 in 0 : vector<1x8x8xbf16>, vector<1x8x8xbf16>, vector<1x8x8xbf16>, vector<1x8x8xbf16> -> vector<4x8x8xbf16>
    "tpu.trace_start"() <{level = 10 : i32, message = "hqd,hkd->hqk"}> : () -> ()
    %cst_22 = arith.constant dense<0.000000e+00> : vector<4x8x8xf32>
    %74 = tpu.matmul %53, %63, %cst_22 {dimension_numbers = #tpu.dot_dimension_numbers<[2], [2], [1], [1], [0, 0, 0, 1, 1, 1], [0], [0]>} : vector<4x8x8xbf16>, vector<4x8x8xbf16>, vector<4x8x8xf32> -> vector<4x8x8xf32>
    "tpu.trace_stop"() : () -> ()
    %cst_23 = arith.constant dense<0xFF800000> : vector<4x8xf32>
    %75 = vector.multi_reduction <maximumf>, %74, %cst_23 [2] : vector<4x8x8xf32> to vector<4x8xf32>
    %76 = vector.shape_cast %75 : vector<4x8xf32> to vector<4x8x1xf32>
    %77 = vector.broadcast %76 : vector<4x8x1xf32> to vector<4x8x8xf32>
    %78 = arith.subf %74, %77 : vector<4x8x8xf32>
    %79 = math.exp %78 : vector<4x8x8xf32>
    %cst_24 = arith.constant dense<0.000000e+00> : vector<4x8xf32>
    %80 = vector.multi_reduction <add>, %79, %cst_24 [2] : vector<4x8x8xf32> to vector<4x8xf32>
    %81 = vector.shape_cast %80 : vector<4x8xf32> to vector<4x8x1xf32>
    %82 = tpu.reciprocal %81 {approx = true} : vector<4x8x1xf32> -> vector<4x8x1xf32>
    %83 = vector.broadcast %82 : vector<4x8x1xf32> to vector<4x8x8xf32>
    %84 = arith.mulf %79, %83 : vector<4x8x8xf32>
    %85 = arith.truncf %84 : vector<4x8x8xf32> to vector<4x8x8xbf16>
    "tpu.trace_start"() <{level = 10 : i32, message = "hqk,hkd->hqd"}> : () -> ()
    %cst_25 = arith.constant dense<0.000000e+00> : vector<4x8x8xf32>
    %86 = tpu.matmul %85, %73, %cst_25 {dimension_numbers = #tpu.dot_dimension_numbers<[2], [1], [1], [2], [0, 0, 0, 1, 1, 2], [0], [0]>} : vector<4x8x8xbf16>, vector<4x8x8xbf16>, vector<4x8x8xf32> -> vector<4x8x8xf32>
    "tpu.trace_stop"() : () -> ()
    %87 = vector.extract_strided_slice %86 {offsets = [0, 0, 0], sizes = [1, 8, 8], strides = [1, 1, 1]} : vector<4x8x8xf32> to vector<1x8x8xf32>
    %88 = vector.shape_cast %87 : vector<1x8x8xf32> to vector<8x8xf32>
    %89 = vector.extract_strided_slice %86 {offsets = [1, 0, 0], sizes = [1, 8, 8], strides = [1, 1, 1]} : vector<4x8x8xf32> to vector<1x8x8xf32>
    %90 = vector.shape_cast %89 : vector<1x8x8xf32> to vector<8x8xf32>
    %91 = vector.extract_strided_slice %86 {offsets = [2, 0, 0], sizes = [1, 8, 8], strides = [1, 1, 1]} : vector<4x8x8xf32> to vector<1x8x8xf32>
    %92 = vector.shape_cast %91 : vector<1x8x8xf32> to vector<8x8xf32>
    %93 = vector.extract_strided_slice %86 {offsets = [3, 0, 0], sizes = [1, 8, 8], strides = [1, 1, 1]} : vector<4x8x8xf32> to vector<1x8x8xf32>
    %94 = vector.shape_cast %93 : vector<1x8x8xf32> to vector<8x8xf32>
    %95 = tpu.concatenate %88, %90, %92, %94 in 1 : vector<8x8xf32>, vector<8x8xf32>, vector<8x8xf32>, vector<8x8xf32> -> vector<8x32xf32>
    %96 = arith.truncf %95 : vector<8x32xf32> to vector<8x32xbf16>
    %c0_26 = arith.constant 0 : index
    %c0_27 = arith.constant 0 : index
    %97 = vector.load %arg15[%c0_26, %c0_27] : memref<32x32xbf16, #tpu.memory_space<vmem>>, vector<32x32xbf16>
    %cst_28 = arith.constant dense<0.000000e+00> : vector<8x32xf32>
    %98 = tpu.matmul %96, %97, %cst_28 {dimension_numbers = #tpu.dot_dimension_numbers<[1], [0], [0], [1], [0, 0, 1, 1], [], []>} : vector<8x32xbf16>, vector<32x32xbf16>, vector<8x32xf32> -> vector<8x32xf32>
    %99 = arith.addf %10, %98 : vector<8x32xf32>
    %c0_29 = arith.constant 0 : index
    %c0_30 = arith.constant 0 : index
    %100 = vector.load %arg16[%c0_29, %c0_30] : memref<1x32xf32, #tpu.memory_space<vmem>>, vector<1x32xf32>
    %101 = vector.broadcast %100 : vector<1x32xf32> to vector<8x32xf32>
    %102 = arith.addf %99, %101 : vector<8x32xf32>
    %cst_31 = arith.constant dense<0.000000e+00> : vector<8xf32>
    %103 = vector.multi_reduction <add>, %102, %cst_31 [1] : vector<8x32xf32> to vector<8xf32>
    %104 = vector.shape_cast %103 : vector<8xf32> to vector<8x1xf32>
    %cst_32 = arith.constant 3.200000e+01 : f32
    %105 = vector.broadcast %cst_32 : f32 to vector<8x1xf32>
    %106 = arith.divf %104, %105 : vector<8x1xf32>
    %107 = vector.broadcast %106 : vector<8x1xf32> to vector<8x32xf32>
    %108 = arith.subf %102, %107 : vector<8x32xf32>
    %109 = arith.mulf %108, %108 : vector<8x32xf32>
    %cst_33 = arith.constant dense<0.000000e+00> : vector<8xf32>
    %110 = vector.multi_reduction <add>, %109, %cst_33 [1] : vector<8x32xf32> to vector<8xf32>
    %111 = vector.shape_cast %110 : vector<8xf32> to vector<8x1xf32>
    %cst_34 = arith.constant 3.200000e+01 : f32
    %112 = vector.broadcast %cst_34 : f32 to vector<8x1xf32>
    %113 = arith.divf %111, %112 : vector<8x1xf32>
    %114 = vector.broadcast %106 : vector<8x1xf32> to vector<8x32xf32>
    %115 = arith.subf %102, %114 : vector<8x32xf32>
    %cst_35 = arith.constant 9.99999997E-7 : f32
    %116 = vector.broadcast %cst_35 : f32 to vector<8x1xf32>
    %117 = arith.addf %113, %116 : vector<8x1xf32>
    %118 = math.rsqrt %117 : vector<8x1xf32>
    %119 = vector.broadcast %118 : vector<8x1xf32> to vector<8x32xf32>
    %120 = arith.mulf %115, %119 : vector<8x32xf32>
    %c0_36 = arith.constant 0 : index
    %c0_37 = arith.constant 0 : index
    %121 = vector.load %arg9[%c0_36, %c0_37] : memref<1x32xf32, #tpu.memory_space<vmem>>, vector<1x32xf32>
    %122 = vector.broadcast %121 : vector<1x32xf32> to vector<8x32xf32>
    %123 = arith.mulf %120, %122 : vector<8x32xf32>
    %c0_38 = arith.constant 0 : index
    %c0_39 = arith.constant 0 : index
    %124 = vector.load %arg10[%c0_38, %c0_39] : memref<1x32xf32, #tpu.memory_space<vmem>>, vector<1x32xf32>
    %125 = vector.broadcast %124 : vector<1x32xf32> to vector<8x32xf32>
    %126 = arith.addf %123, %125 : vector<8x32xf32>
    %127 = arith.truncf %126 : vector<8x32xf32> to vector<8x32xbf16>
    %c0_40 = arith.constant 0 : index
    %c0_41 = arith.constant 0 : index
    %128 = vector.load %arg17[%c0_40, %c0_41] : memref<32x32xbf16, #tpu.memory_space<vmem>>, vector<32x32xbf16>
    %cst_42 = arith.constant dense<0.000000e+00> : vector<8x32xf32>
    %129 = tpu.matmul %127, %128, %cst_42 {dimension_numbers = #tpu.dot_dimension_numbers<[1], [0], [0], [1], [0, 0, 1, 1], [], []>} : vector<8x32xbf16>, vector<32x32xbf16>, vector<8x32xf32> -> vector<8x32xf32>
    %c0_43 = arith.constant 0 : index
    %c0_44 = arith.constant 0 : index
    %130 = vector.load %arg18[%c0_43, %c0_44] : memref<1x32xf32, #tpu.memory_space<vmem>>, vector<1x32xf32>
    %131 = vector.broadcast %130 : vector<1x32xf32> to vector<8x32xf32>
    %132 = arith.addf %129, %131 : vector<8x32xf32>
    %c0_45 = arith.constant 0 : index
    %c0_46 = arith.constant 0 : index
    %133 = vector.load %arg29[%c0_45, %c0_46] : memref<8x64xbf16, #tpu.memory_space<vmem>>, vector<8x64xbf16>
    %134 = arith.truncf %132 : vector<8x32xf32> to vector<8x32xbf16>
    %135 = vector.extract_strided_slice %134 {offsets = [0, 0], sizes = [8, 8], strides = [1, 1]} : vector<8x32xbf16> to vector<8x8xbf16>
    %136 = vector.extract_strided_slice %134 {offsets = [0, 8], sizes = [8, 8], strides = [1, 1]} : vector<8x32xbf16> to vector<8x8xbf16>
    %137 = vector.extract_strided_slice %134 {offsets = [0, 16], sizes = [8, 8], strides = [1, 1]} : vector<8x32xbf16> to vector<8x8xbf16>
    %138 = vector.extract_strided_slice %134 {offsets = [0, 24], sizes = [8, 8], strides = [1, 1]} : vector<8x32xbf16> to vector<8x8xbf16>
    %139 = vector.shape_cast %135 : vector<8x8xbf16> to vector<1x8x8xbf16>
    %140 = vector.shape_cast %136 : vector<8x8xbf16> to vector<1x8x8xbf16>
    %141 = vector.shape_cast %137 : vector<8x8xbf16> to vector<1x8x8xbf16>
    %142 = vector.shape_cast %138 : vector<8x8xbf16> to vector<1x8x8xbf16>
    %143 = tpu.concatenate %139, %140, %141, %142 in 0 : vector<1x8x8xbf16>, vector<1x8x8xbf16>, vector<1x8x8xbf16>, vector<1x8x8xbf16> -> vector<4x8x8xbf16>
    %144 = vector.extract_strided_slice %133 {offsets = [0, 0], sizes = [8, 32], strides = [1, 1]} : vector<8x64xbf16> to vector<8x32xbf16>
    %145 = vector.extract_strided_slice %144 {offsets = [0, 0], sizes = [8, 8], strides = [1, 1]} : vector<8x32xbf16> to vector<8x8xbf16>
    %146 = vector.extract_strided_slice %144 {offsets = [0, 8], sizes = [8, 8], strides = [1, 1]} : vector<8x32xbf16> to vector<8x8xbf16>
    %147 = vector.extract_strided_slice %144 {offsets = [0, 16], sizes = [8, 8], strides = [1, 1]} : vector<8x32xbf16> to vector<8x8xbf16>
    %148 = vector.extract_strided_slice %144 {offsets = [0, 24], sizes = [8, 8], strides = [1, 1]} : vector<8x32xbf16> to vector<8x8xbf16>
    %149 = vector.shape_cast %145 : vector<8x8xbf16> to vector<1x8x8xbf16>
    %150 = vector.shape_cast %146 : vector<8x8xbf16> to vector<1x8x8xbf16>
    %151 = vector.shape_cast %147 : vector<8x8xbf16> to vector<1x8x8xbf16>
    %152 = vector.shape_cast %148 : vector<8x8xbf16> to vector<1x8x8xbf16>
    %153 = tpu.concatenate %149, %150, %151, %152 in 0 : vector<1x8x8xbf16>, vector<1x8x8xbf16>, vector<1x8x8xbf16>, vector<1x8x8xbf16> -> vector<4x8x8xbf16>
    %154 = vector.extract_strided_slice %133 {offsets = [0, 32], sizes = [8, 32], strides = [1, 1]} : vector<8x64xbf16> to vector<8x32xbf16>
    %155 = vector.extract_strided_slice %154 {offsets = [0, 0], sizes = [8, 8], strides = [1, 1]} : vector<8x32xbf16> to vector<8x8xbf16>
    %156 = vector.extract_strided_slice %154 {offsets = [0, 8], sizes = [8, 8], strides = [1, 1]} : vector<8x32xbf16> to vector<8x8xbf16>
    %157 = vector.extract_strided_slice %154 {offsets = [0, 16], sizes = [8, 8], strides = [1, 1]} : vector<8x32xbf16> to vector<8x8xbf16>
    %158 = vector.extract_strided_slice %154 {offsets = [0, 24], sizes = [8, 8], strides = [1, 1]} : vector<8x32xbf16> to vector<8x8xbf16>
    %159 = vector.shape_cast %155 : vector<8x8xbf16> to vector<1x8x8xbf16>
    %160 = vector.shape_cast %156 : vector<8x8xbf16> to vector<1x8x8xbf16>
    %161 = vector.shape_cast %157 : vector<8x8xbf16> to vector<1x8x8xbf16>
    %162 = vector.shape_cast %158 : vector<8x8xbf16> to vector<1x8x8xbf16>
    %163 = tpu.concatenate %159, %160, %161, %162 in 0 : vector<1x8x8xbf16>, vector<1x8x8xbf16>, vector<1x8x8xbf16>, vector<1x8x8xbf16> -> vector<4x8x8xbf16>
    "tpu.trace_start"() <{level = 10 : i32, message = "hqd,hkd->hqk"}> : () -> ()
    %cst_47 = arith.constant dense<0.000000e+00> : vector<4x8x8xf32>
    %164 = tpu.matmul %143, %153, %cst_47 {dimension_numbers = #tpu.dot_dimension_numbers<[2], [2], [1], [1], [0, 0, 0, 1, 1, 1], [0], [0]>} : vector<4x8x8xbf16>, vector<4x8x8xbf16>, vector<4x8x8xf32> -> vector<4x8x8xf32>
    "tpu.trace_stop"() : () -> ()
    %cst_48 = arith.constant dense<0xFF800000> : vector<4x8xf32>
    %165 = vector.multi_reduction <maximumf>, %164, %cst_48 [2] : vector<4x8x8xf32> to vector<4x8xf32>
    %166 = vector.shape_cast %165 : vector<4x8xf32> to vector<4x8x1xf32>
    %167 = vector.broadcast %166 : vector<4x8x1xf32> to vector<4x8x8xf32>
    %168 = arith.subf %164, %167 : vector<4x8x8xf32>
    %169 = math.exp %168 : vector<4x8x8xf32>
    %cst_49 = arith.constant dense<0.000000e+00> : vector<4x8xf32>
    %170 = vector.multi_reduction <add>, %169, %cst_49 [2] : vector<4x8x8xf32> to vector<4x8xf32>
    %171 = vector.shape_cast %170 : vector<4x8xf32> to vector<4x8x1xf32>
    %172 = tpu.reciprocal %171 {approx = true} : vector<4x8x1xf32> -> vector<4x8x1xf32>
    %173 = vector.broadcast %172 : vector<4x8x1xf32> to vector<4x8x8xf32>
    %174 = arith.mulf %169, %173 : vector<4x8x8xf32>
    %175 = arith.truncf %174 : vector<4x8x8xf32> to vector<4x8x8xbf16>
    "tpu.trace_start"() <{level = 10 : i32, message = "hqk,hkd->hqd"}> : () -> ()
    %cst_50 = arith.constant dense<0.000000e+00> : vector<4x8x8xf32>
    %176 = tpu.matmul %175, %163, %cst_50 {dimension_numbers = #tpu.dot_dimension_numbers<[2], [1], [1], [2], [0, 0, 0, 1, 1, 2], [0], [0]>} : vector<4x8x8xbf16>, vector<4x8x8xbf16>, vector<4x8x8xf32> -> vector<4x8x8xf32>
    "tpu.trace_stop"() : () -> ()
    %177 = vector.extract_strided_slice %176 {offsets = [0, 0, 0], sizes = [1, 8, 8], strides = [1, 1, 1]} : vector<4x8x8xf32> to vector<1x8x8xf32>
    %178 = vector.shape_cast %177 : vector<1x8x8xf32> to vector<8x8xf32>
    %179 = vector.extract_strided_slice %176 {offsets = [1, 0, 0], sizes = [1, 8, 8], strides = [1, 1, 1]} : vector<4x8x8xf32> to vector<1x8x8xf32>
    %180 = vector.shape_cast %179 : vector<1x8x8xf32> to vector<8x8xf32>
    %181 = vector.extract_strided_slice %176 {offsets = [2, 0, 0], sizes = [1, 8, 8], strides = [1, 1, 1]} : vector<4x8x8xf32> to vector<1x8x8xf32>
    %182 = vector.shape_cast %181 : vector<1x8x8xf32> to vector<8x8xf32>
    %183 = vector.extract_strided_slice %176 {offsets = [3, 0, 0], sizes = [1, 8, 8], strides = [1, 1, 1]} : vector<4x8x8xf32> to vector<1x8x8xf32>
    %184 = vector.shape_cast %183 : vector<1x8x8xf32> to vector<8x8xf32>
    %185 = tpu.concatenate %178, %180, %182, %184 in 1 : vector<8x8xf32>, vector<8x8xf32>, vector<8x8xf32>, vector<8x8xf32> -> vector<8x32xf32>
    %186 = arith.truncf %185 : vector<8x32xf32> to vector<8x32xbf16>
    %c0_51 = arith.constant 0 : index
    %c0_52 = arith.constant 0 : index
    %187 = vector.load %arg21[%c0_51, %c0_52] : memref<32x32xbf16, #tpu.memory_space<vmem>>, vector<32x32xbf16>
    %cst_53 = arith.constant dense<0.000000e+00> : vector<8x32xf32>
    %188 = tpu.matmul %186, %187, %cst_53 {dimension_numbers = #tpu.dot_dimension_numbers<[1], [0], [0], [1], [0, 0, 1, 1], [], []>} : vector<8x32xbf16>, vector<32x32xbf16>, vector<8x32xf32> -> vector<8x32xf32>
    %189 = arith.addf %102, %188 : vector<8x32xf32>
    %c0_54 = arith.constant 0 : index
    %c0_55 = arith.constant 0 : index
    %190 = vector.load %arg22[%c0_54, %c0_55] : memref<1x32xf32, #tpu.memory_space<vmem>>, vector<1x32xf32>
    %191 = vector.broadcast %190 : vector<1x32xf32> to vector<8x32xf32>
    %192 = arith.addf %189, %191 : vector<8x32xf32>
    %cst_56 = arith.constant dense<0.000000e+00> : vector<8xf32>
    %193 = vector.multi_reduction <add>, %192, %cst_56 [1] : vector<8x32xf32> to vector<8xf32>
    %194 = vector.shape_cast %193 : vector<8xf32> to vector<8x1xf32>
    %cst_57 = arith.constant 3.200000e+01 : f32
    %195 = vector.broadcast %cst_57 : f32 to vector<8x1xf32>
    %196 = arith.divf %194, %195 : vector<8x1xf32>
    %197 = vector.broadcast %196 : vector<8x1xf32> to vector<8x32xf32>
    %198 = arith.subf %192, %197 : vector<8x32xf32>
    %199 = arith.mulf %198, %198 : vector<8x32xf32>
    %cst_58 = arith.constant dense<0.000000e+00> : vector<8xf32>
    %200 = vector.multi_reduction <add>, %199, %cst_58 [1] : vector<8x32xf32> to vector<8xf32>
    %201 = vector.shape_cast %200 : vector<8xf32> to vector<8x1xf32>
    %cst_59 = arith.constant 3.200000e+01 : f32
    %202 = vector.broadcast %cst_59 : f32 to vector<8x1xf32>
    %203 = arith.divf %201, %202 : vector<8x1xf32>
    %204 = vector.broadcast %196 : vector<8x1xf32> to vector<8x32xf32>
    %205 = arith.subf %192, %204 : vector<8x32xf32>
    %cst_60 = arith.constant 9.99999997E-7 : f32
    %206 = vector.broadcast %cst_60 : f32 to vector<8x1xf32>
    %207 = arith.addf %203, %206 : vector<8x1xf32>
    %208 = math.rsqrt %207 : vector<8x1xf32>
    %209 = vector.broadcast %208 : vector<8x1xf32> to vector<8x32xf32>
    %210 = arith.mulf %205, %209 : vector<8x32xf32>
    %c0_61 = arith.constant 0 : index
    %c0_62 = arith.constant 0 : index
    %211 = vector.load %arg7[%c0_61, %c0_62] : memref<1x32xf32, #tpu.memory_space<vmem>>, vector<1x32xf32>
    %212 = vector.broadcast %211 : vector<1x32xf32> to vector<8x32xf32>
    %213 = arith.mulf %210, %212 : vector<8x32xf32>
    %c0_63 = arith.constant 0 : index
    %c0_64 = arith.constant 0 : index
    %214 = vector.load %arg8[%c0_63, %c0_64] : memref<1x32xf32, #tpu.memory_space<vmem>>, vector<1x32xf32>
    %215 = vector.broadcast %214 : vector<1x32xf32> to vector<8x32xf32>
    %216 = arith.addf %213, %215 : vector<8x32xf32>
    %217 = arith.truncf %216 : vector<8x32xf32> to vector<8x32xbf16>
    %cst_65 = arith.constant 0.000000e+00 : f32
    %218 = vector.broadcast %cst_65 : f32 to vector<8x32xf32>
    %c0_i32_66 = arith.constant 0 : i32
    %c128_i32 = arith.constant 128 : i32
    %219 = arith.muli %c0_i32_66, %c128_i32 : i32
    %220 = tpu.assume_multiple %219, 128 : i32
    %c0_67 = arith.constant 0 : index
    %221 = arith.index_cast %220 : i32 to index
    %222 = vector.load %arg23[%c0_67, %221] : memref<32x128xbf16, #tpu.memory_space<vmem>>, vector<32x128xbf16>
    %cst_68 = arith.constant dense<0.000000e+00> : vector<8x128xf32>
    %223 = tpu.matmul %217, %222, %cst_68 {dimension_numbers = #tpu.dot_dimension_numbers<[1], [0], [0], [1], [0, 0, 1, 1], [], []>} : vector<8x32xbf16>, vector<32x128xbf16>, vector<8x128xf32> -> vector<8x128xf32>
    %c0_69 = arith.constant 0 : index
    %224 = arith.index_cast %220 : i32 to index
    %225 = vector.load %arg24[%c0_69, %224] : memref<1x128xf32, #tpu.memory_space<vmem>>, vector<1x128xf32>
    %226 = vector.broadcast %225 : vector<1x128xf32> to vector<8x128xf32>
    %227 = arith.addf %223, %226 : vector<8x128xf32>
    %cst_70 = arith.constant 5.000000e-01 : f32
    %228 = vector.broadcast %cst_70 : f32 to vector<8x128xf32>
    %229 = arith.mulf %228, %227 : vector<8x128xf32>
    %cst_71 = arith.constant 4.471500e-02 : f32
    %230 = vector.broadcast %cst_71 : f32 to vector<8x128xf32>
    %231 = arith.mulf %230, %227 : vector<8x128xf32>
    %232 = arith.mulf %231, %227 : vector<8x128xf32>
    %233 = arith.mulf %232, %227 : vector<8x128xf32>
    %234 = arith.addf %227, %233 : vector<8x128xf32>
    %cst_72 = arith.constant 0.797884583 : f32
    %235 = vector.broadcast %cst_72 : f32 to vector<8x128xf32>
    %236 = arith.mulf %235, %234 : vector<8x128xf32>
    %237 = math.tanh %236 : vector<8x128xf32>
    %cst_73 = arith.constant 1.000000e+00 : f32
    %238 = vector.broadcast %cst_73 : f32 to vector<8x128xf32>
    %239 = arith.addf %238, %237 : vector<8x128xf32>
    %240 = arith.mulf %229, %239 : vector<8x128xf32>
    %241 = arith.truncf %240 : vector<8x128xf32> to vector<8x128xbf16>
    %242 = arith.index_cast %220 : i32 to index
    %c0_74 = arith.constant 0 : index
    %243 = vector.load %arg25[%242, %c0_74] : memref<128x32xbf16, #tpu.memory_space<vmem>>, vector<128x32xbf16>
    %cst_75 = arith.constant dense<0.000000e+00> : vector<8x32xf32>
    %244 = tpu.matmul %241, %243, %cst_75 {dimension_numbers = #tpu.dot_dimension_numbers<[1], [0], [0], [1], [0, 0, 1, 1], [], []>} : vector<8x128xbf16>, vector<128x32xbf16>, vector<8x32xf32> -> vector<8x32xf32>
    %245 = arith.addf %218, %244 : vector<8x32xf32>
    %c1_i32 = arith.constant 1 : i32
    %246 = arith.addf %192, %245 : vector<8x32xf32>
    %c0_76 = arith.constant 0 : index
    %c0_77 = arith.constant 0 : index
    %247 = vector.load %arg26[%c0_76, %c0_77] : memref<1x32xf32, #tpu.memory_space<vmem>>, vector<1x32xf32>
    %248 = vector.broadcast %247 : vector<1x32xf32> to vector<8x32xf32>
    %249 = arith.addf %246, %248 : vector<8x32xf32>
    %c0_78 = arith.constant 0 : index
    %c0_79 = arith.constant 0 : index
    %c0_80 = arith.constant 0 : index
    %250 = vector.load %arg27[%c0_78, %c0_79, %c0_80] : memref<1x8x32xf32, #tpu.memory_space<vmem>>, vector<1x8x32xf32>
    %251 = vector.shape_cast %250 : vector<1x8x32xf32> to vector<8x32xf32>
    %252 = vector.shape_cast %249 : vector<8x32xf32> to vector<1x8x32xf32>
    tpu.vector_store %arg27[%c0_78, %c0_79, %c0_80], %252 {strides = array<i32>} : memref<1x8x32xf32, #tpu.memory_space<vmem>>, vector<1x8x32xf32>,
    return
  }
  func.func @transform_0(%arg0: i32, %arg1: i32) -> (i32, i32, i32) {
    %c0_i32 = arith.constant 0 : i32
    %c0_i32_0 = arith.constant 0 : i32
    %c0_i32_1 = arith.constant 0 : i32
    return %arg0, %c0_i32, %c0_i32_0 : i32, i32, i32
  }
  func.func @transform_1(%arg0: i32, %arg1: i32) -> (i32, i32, i32) {
    %c0_i32 = arith.constant 0 : i32
    %c0_i32_0 = arith.constant 0 : i32
    %c0_i32_1 = arith.constant 0 : i32
    return %arg0, %c0_i32, %c0_i32_0 : i32, i32, i32
  }
  func.func @transform_2(%arg0: i32, %arg1: i32) -> (i32, i32, i32) {
    %c0_i32 = arith.constant 0 : i32
    %c0_i32_0 = arith.constant 0 : i32
    %c0_i32_1 = arith.constant 0 : i32
    return %arg0, %c0_i32, %c0_i32_0 : i32, i32, i32
  }
  func.func @transform_3(%arg0: i32, %arg1: i32) -> (i32, i32) {
    %c0_i32 = arith.constant 0 : i32
    %c0_i32_0 = arith.constant 0 : i32
    %c0_i32_1 = arith.constant 0 : i32
    return %c0_i32, %c0_i32_0 : i32, i32
  }
  func.func @transform_4(%arg0: i32, %arg1: i32) -> (i32, i32) {
    %c0_i32 = arith.constant 0 : i32
    %c0_i32_0 = arith.constant 0 : i32
    %c0_i32_1 = arith.constant 0 : i32
    return %c0_i32, %c0_i32_0 : i32, i32
  }
  func.func @transform_5(%arg0: i32, %arg1: i32) -> (i32, i32) {
    %c0_i32 = arith.constant 0 : i32
    %c0_i32_0 = arith.constant 0 : i32
    %c0_i32_1 = arith.constant 0 : i32
    return %c0_i32, %c0_i32_0 : i32, i32
  }
  func.func @transform_6(%arg0: i32, %arg1: i32) -> (i32, i32) {
    %c0_i32 = arith.constant 0 : i32
    %c0_i32_0 = arith.constant 0 : i32
    %c0_i32_1 = arith.constant 0 : i32
    return %c0_i32, %c0_i32_0 : i32, i32
  }
  func.func @transform_7(%arg0: i32, %arg1: i32) -> (i32, i32) {
    %c0_i32 = arith.constant 0 : i32
    %c0_i32_0 = arith.constant 0 : i32
    %c0_i32_1 = arith.constant 0 : i32
    return %c0_i32, %c0_i32_0 : i32, i32
  }
  func.func @transform_8(%arg0: i32, %arg1: i32) -> (i32, i32) {
    %c0_i32 = arith.constant 0 : i32
    %c0_i32_0 = arith.constant 0 : i32
    %c0_i32_1 = arith.constant 0 : i32
    return %c0_i32, %c0_i32_0 : i32, i32
  }
  func.func @transform_9(%arg0: i32, %arg1: i32) -> (i32, i32) {
    %c0_i32 = arith.constant 0 : i32
    %c0_i32_0 = arith.constant 0 : i32
    %c0_i32_1 = arith.constant 0 : i32
    return %c0_i32, %c0_i32_0 : i32, i32
  }
  func.func @transform_10(%arg0: i32, %arg1: i32) -> (i32, i32) {
    %c0_i32 = arith.constant 0 : i32
    %c0_i32_0 = arith.constant 0 : i32
    %c0_i32_1 = arith.constant 0 : i32
    return %c0_i32, %c0_i32_0 : i32, i32
  }
  func.func @transform_11(%arg0: i32, %arg1: i32) -> (i32, i32) {
    %c0_i32 = arith.constant 0 : i32
    %c0_i32_0 = arith.constant 0 : i32
    %c0_i32_1 = arith.constant 0 : i32
    return %c0_i32, %c0_i32_0 : i32, i32
  }
  func.func @transform_12(%arg0: i32, %arg1: i32) -> (i32, i32) {
    %c0_i32 = arith.constant 0 : i32
    %c0_i32_0 = arith.constant 0 : i32
    %c0_i32_1 = arith.constant 0 : i32
    return %c0_i32, %c0_i32_0 : i32, i32
  }
  func.func @transform_13(%arg0: i32, %arg1: i32) -> (i32, i32) {
    %c0_i32 = arith.constant 0 : i32
    %c0_i32_0 = arith.constant 0 : i32
    %c0_i32_1 = arith.constant 0 : i32
    return %c0_i32, %c0_i32_0 : i32, i32
  }
  func.func @transform_14(%arg0: i32, %arg1: i32) -> (i32, i32) {
    %c0_i32 = arith.constant 0 : i32
    %c0_i32_0 = arith.constant 0 : i32
    %c0_i32_1 = arith.constant 0 : i32
    return %c0_i32, %c0_i32_0 : i32, i32
  }
  func.func @transform_15(%arg0: i32, %arg1: i32) -> (i32, i32) {
    %c0_i32 = arith.constant 0 : i32
    %c0_i32_0 = arith.constant 0 : i32
    %c0_i32_1 = arith.constant 0 : i32
    return %c0_i32, %c0_i32_0 : i32, i32
  }
  func.func @transform_16(%arg0: i32, %arg1: i32) -> (i32, i32) {
    %c0_i32 = arith.constant 0 : i32
    %c0_i32_0 = arith.constant 0 : i32
    %c0_i32_1 = arith.constant 0 : i32
    return %c0_i32, %c0_i32_0 : i32, i32
  }
  func.func @transform_17(%arg0: i32, %arg1: i32) -> (i32, i32) {
    %c0_i32 = arith.constant 0 : i32
    %c0_i32_0 = arith.constant 0 : i32
    %c0_i32_1 = arith.constant 0 : i32
    return %c0_i32, %c0_i32_0 : i32, i32
  }
  func.func @transform_18(%arg0: i32, %arg1: i32) -> (i32, i32) {
    %c0_i32 = arith.constant 0 : i32
    %c0_i32_0 = arith.constant 0 : i32
    %c0_i32_1 = arith.constant 0 : i32
    return %c0_i32, %c0_i32_0 : i32, i32
  }
  func.func @transform_19(%arg0: i32, %arg1: i32) -> (i32, i32) {
    %c0_i32 = arith.constant 0 : i32
    %c0_i32_0 = arith.constant 0 : i32
    %c0_i32_1 = arith.constant 0 : i32
    return %c0_i32, %c0_i32_0 : i32, i32
  }
  func.func @transform_20(%arg0: i32, %arg1: i32) -> (i32, i32) {
    %c0_i32 = arith.constant 0 : i32
    %c0_i32_0 = arith.constant 0 : i32
    %c0_i32_1 = arith.constant 0 : i32
    return %c0_i32, %c0_i32_0 : i32, i32
  }
  func.func @transform_21(%arg0: i32, %arg1: i32) -> (i32, i32) {
    %c0_i32 = arith.constant 0 : i32
    %c0_i32_0 = arith.constant 0 : i32
    %c0_i32_1 = arith.constant 0 : i32
    return %c0_i32, %c0_i32_0 : i32, i32
  }
  func.func @transform_22(%arg0: i32, %arg1: i32) -> (i32, i32) {
    %c0_i32 = arith.constant 0 : i32
    %c0_i32_0 = arith.constant 0 : i32
    %c0_i32_1 = arith.constant 0 : i32
    return %c0_i32, %c0_i32_0 : i32, i32
  }
  func.func @transform_23(%arg0: i32, %arg1: i32) -> (i32, i32) {
    %c0_i32 = arith.constant 0 : i32
    %c0_i32_0 = arith.constant 0 : i32
    %c0_i32_1 = arith.constant 0 : i32
    return %c0_i32, %c0_i32_0 : i32, i32
  }
  func.func @transform_24(%arg0: i32, %arg1: i32) -> (i32, i32) {
    %c0_i32 = arith.constant 0 : i32
    %c0_i32_0 = arith.constant 0 : i32
    %c0_i32_1 = arith.constant 0 : i32
    return %c0_i32, %c0_i32_0 : i32, i32
  }
  func.func @transform_25(%arg0: i32, %arg1: i32) -> (i32, i32, i32) {
    %c0_i32 = arith.constant 0 : i32
    %c0_i32_0 = arith.constant 0 : i32
    return %arg0, %arg1, %c0_i32 : i32, i32, i32
  }
}

</mosaic_0001>

<bundles_post_ra>
// kernel: tpu_custom_call.1
= control target key start
LH: loop header
LB: loop body
LE: loop exit
PB: predicated region body
PF: predicated region fallthrough
CT: control target
= control target key end

     0   :  { %s4791_s0 = inlined_call_operand.vmem [shape: f32[2,8,32], index: 0, kind: input, shape index: {}]   ;;  %s4792_s1 = inlined_call_operand.hbm [shape: f32[2,1,32], index: 1, kind: input, shape index: {}]   ;;  %s4793_s2 = inlined_call_operand.hbm [shape: bf16[2,8,32], index: 2, kind: input, shape index: {}]   ;;  %s4794_s3 = inlined_call_operand.hbm [shape: f32[1,32], index: 3, kind: input, shape index: {}]   ;;  %s4795_s4 = inlined_call_operand.hbm [shape: f32[1,32], index: 4, kind: input, shape index: {}]   ;;  %s4796_s5 = inlined_call_operand.hbm [shape: f32[1,32], index: 5, kind: input, shape index: {}]   ;;  %s4797_s6 = inlined_call_operand.hbm [shape: f32[1,32], index: 6, kind: input, shape index: {}]   ;;  %s4798_s7 = inlined_call_operand.hbm [shape: f32[1,32], index: 7, kind: input, shape index: {}]   ;;  %s4799_s8 = inlined_call_operand.hbm [shape: f32[1,32], index: 8, kind: input, shape index: {}]   ;;  %s4800_s9 = inlined_call_operand.vmem [shape: bf16[32,32], index: 9, kind: input, shape index: {}]   ;;  %s4801_s10 = inlined_call_operand.hbm [shape: f32[1,32], index: 10, kind: input, shape index: {}]   ;;  %s4802_s11 = inlined_call_operand.vmem [shape: bf16[32,64], index: 11, kind: input, shape index: {}]   ;;  %s4803_s12 = inlined_call_operand.hbm [shape: f32[1,64], index: 12, kind: input, shape index: {}]   ;;  %s4804_s13 = inlined_call_operand.vmem [shape: bf16[32,32], index: 13, kind: input, shape index: {}]   ;;  %s4805_s14 = inlined_call_operand.hbm [shape: f32[1,32], index: 14, kind: input, shape index: {}]   ;;  %s4806_s15 = inlined_call_operand.vmem [shape: bf16[32,32], index: 15, kind: input, shape index: {}]   ;;  %s4807_s16 = inlined_call_operand.hbm [shape: f32[1,32], index: 16, kind: input, shape index: {}]   ;;  %s4808_s17 = inlined_call_operand.vmem [shape: bf16[32,64], index: 17, kind: input, shape index: {}]   ;;  %s4809_s18 = inlined_call_operand.hbm [shape: f32[1,64], index: 18, kind: input, shape index: {}]   ;;  %s4810_s19 = inlined_call_operand.vmem [shape: bf16[32,32], index: 19, kind: input, shape index: {}]   ;;  %s4811_s20 = inlined_call_operand.vmem [shape: f32[1,32], index: 20, kind: input, shape index: {}]   ;;  %s4812_s21 = inlined_call_operand.hbm [shape: bf16[32,128], index: 21, kind: input, shape index: {}]   ;;  %s4813_s22 = inlined_call_operand.vmem [shape: f32[1,128], index: 22, kind: input, shape index: {}]   ;;  %s4814_s23 = inlined_call_operand.vmem [shape: bf16[128,32], index: 23, kind: input, shape index: {}]   ;;  %s4815_s24 = inlined_call_operand.vmem [shape: f32[1,32], index: 24, kind: input, shape index: {}]   ;;  %s4816_s25 = inlined_call_operand.hbm [shape: f32[2,8,32], index: 25, kind: output, shape index: {}]  }
   0x1   :  { %4827 = sst [smem:[#allocation42_spill]] %s4791_s0 }
   0x2   :  { %4828 = sst [smem:[#allocation43_spill]] %s4792_s1 }
   0x3   :  { %4829 = sst [smem:[#allocation44_spill]] %s4793_s2 }
   0x4   :  { %4830 = sst [smem:[#allocation45_spill]] %s4794_s3 }
   0x5   :  { %4831 = sst [smem:[#allocation46_spill]] %s4795_s4 }
   0x6   :  { %4832 = sst [smem:[#allocation47_spill]] %s4796_s5 }
   0x7   :  { %4833 = sst [smem:[#allocation48_spill]] %s4797_s6 }
   0x8   :  { %4834 = sst [smem:[#allocation49_spill]] %s4798_s7 }
   0x9   :  { %4835 = sst [smem:[#allocation50_spill]] %s4799_s8 }
   0xa   :  { %4836 = sst [smem:[#allocation51_spill]] %s4800_s9 }
   0xb   :  { %4837 = sst [smem:[#allocation52_spill]] %s4801_s10 }
   0xc   :  { %4838 = sst [smem:[#allocation53_spill]] %s4803_s12 }
   0xd   :  { %4839 = sst [smem:[#allocation54_spill]] %s4805_s14 }
   0xe   :  { %4840 = sst [smem:[#allocation55_spill]] %s4807_s16 }
   0xf   :  { %4841 = sst [smem:[#allocation56_spill]] %s4809_s18 }
  0x10   :  { %4842 = sst [smem:[#allocation57_spill]] %s4810_s19 }
  0x11   :  { %4843 = sst [smem:[#allocation58_spill]] %s4811_s20 }
  0x12   :  { %4844 = sst [smem:[#allocation59_spill]] %s4812_s21 }
  0x13   :  { %4845 = sst [smem:[#allocation60_spill]] %s4813_s22 }
  0x14   :  { %4846 = sst [smem:[#allocation61_spill]] %s4814_s23 }
  0x15   :  { %4847 = sst [smem:[#allocation62_spill]] %s4815_s24 }
  0x16   :  { %4848 = sst [smem:[#allocation63_spill]] %s4816_s25 }
  0x17   :  { %30 = vsyncpa [#allocation5], 0 }
  0x18   :  { %32 = vsyncpa [#allocation5 + $0x1], 0 }
  0x19   :  { %33 = vsyncpa [#allocation8], 0 }
  0x1a   :  { %35 = vsyncpa [#allocation8 + $0x1], 0 }
  0x1b   :  { %36 = vsyncpa [#allocation11], 0 }
  0x1c   :  { %37 = vsyncpa [#allocation14], 0 }
  0x1d   :  { %38 = vsyncpa [#allocation17], 0 }
  0x1e   :  { %39 = vsyncpa [#allocation20], 0 }
  0x1f   :  { %40 = vsyncpa [#allocation23], 0 }
  0x20   :  { %41 = vsyncpa [#allocation26], 0 }
  0x21   :  { %42 = vsyncpa [#allocation6], 0 }
  0x22   :  { %44 = vsyncpa [#allocation6 + $0x1], 0  ;;  %s4161_s29 = smov 0   ;;  %s4163_s2 = smov 0  }
  0x23   :  { %s4165_s6 = smov 0   ;;  %s4167_s30 = smov 0  }
  0x24   :  { %s4169_s7 = smov 0   ;;  %s4171_s3 = smov 0  }
  0x25 LB: > { %4849 = sst [smem:[#allocation38_spill]] %s3991_s6  ;;  %s4192_s26 = sadd.s32 4294967295, %s4003_s3   ;;  %s4003_s3 = sphi %s4171_s3, %s50_s3   ;;  %s3999_s7 = sphi %s4169_s7, %s4909_s7   ;;  %s3995_s30 = sphi %s4167_s30, %s4908_s30   ;;  %s3991_s6 = sphi %s4165_s6, %s4904_s6   ;;  %s3987_s2 = sphi %s4163_s2, %s4907_s2   ;;  %s3983_s29 = sphi %s4161_s29, %s4906_s29  }
  0x26   : > { %4850 = sst [smem:[#allocation39_spill]] %s4003_s3  ;;  %p2917_p0 = scmp.ge.s32.totalorder %s4003_s3, 1 }
  0x27   : > { %p4820_p1 = scmp.eq.s32.totalorder %s4192_s26, 0  ;;  %p635_p2 = scmp.lt.s32.totalorder %s4003_s3, 3 }
  0x28   : > { %s4005_s8 = smov [#allocation9]   ;;  %s4006_s4 = smov [#allocation10]  }
  0x29   : > { %p4197_p3 = pnand %p2917_p0, %p635_p2  ;;  %s648_s27 = sshll.u32 %s4005_s8, 4  ;;  %s649_s27 = int_to_ptr.vmem [resolvable:$true] %s648_s27 }
  0x2a   : > { %s659_s28 = sshll.u32 %s4006_s4, 4  ;;  %s4007_s5 = smov [#allocation13]   ;;  %s660_s28 = int_to_ptr.vmem [resolvable:$true] %s659_s28 }
  0x2b   : > { %s4851_s1 = scalar_select %p4197_p3, 1, 0 }
  0x2c   : > { %p3312_p5 = pneg %p4197_p3  ;;  %s681_s0 = sshll.u32 %s4007_s5, 4  ;;  %s4210_s0 = int_to_ptr.vmem [resolvable:$true] %s681_s0 }
  0x2d   : > { %s3534_s25 = scalar_lea.vmem %s649_s27, 16  ;;  %s3541_s4 = scalar_lea.vmem %s649_s27, 32 }
  0x2e   : > { %p4206_p6 = pnand %p3312_p5, %p4820_p1  ;;  %p3535_p8 = scmp.ne.s32.totalorder %s649_s27, %s3534_s25 }
  0x2f   : > { %p3542_p11 = scmp.lt.s32.totalorder %s649_s27, %s649_s27  ;;  %p3543_p12 = scmp.lt.s32.totalorder %s3541_s4, %s3534_s25 }
  0x30   : > { %p4214_p7 = pneg %p4206_p6 }
  0x31   : > { %p3544_p13 = por %p3543_p12, %p3542_p11 }
  0x32   : > { %p3537_p9 = pnand %p3535_p8, %p4214_p7 }
  0x34   : > { %p3538_p10 = pneg %p3537_p9 }
  0x36   : > { %p3545_p0 = pnand %p3544_p13, %p3538_p10 }
  0x38   : > { %3548 = shalt.err (!%p3545_p0)
}
  0x39   : > { %s4854_s22 = sld [smem:[#allocation45_spill]]  ;;  %s3560_s23 = scalar_lea.vmem %s660_s28, 16 }
  0x3a   : > { %p3561_p2 = scmp.ne.s32.totalorder %s660_s28, %s3560_s23  ;;  %s3567_s20 = scalar_lea.vmem %s660_s28, 32 }
  0x3b   : > { %p3568_p8 = scmp.lt.s32.totalorder %s660_s28, %s660_s28  ;;  %p3569_p9 = scmp.lt.s32.totalorder %s3567_s20, %s3560_s23 }
  0x3c   : > { %p3563_p5 = pnand %p3561_p2, %p4214_p7 }
  0x3d   : > { %p3570_p1 = por %p3569_p9, %p3568_p8 }
  0x3e   : > { %p3564_p4 = pneg %p3563_p5 }
  0x3f   : > { %3315 = dma.hbm_to_vmem [thread:$0]  (!%p4206_p6), %s4854_s22, 16, %s649_s27, [#allocation8]  }
  0x40   : > { %p3571_p3 = pnand %p3570_p1, %p3564_p4 }
  0x42   : > { %3574 = shalt.err (!%p3571_p3)
}
  0x43   : > { %s4855_s19 = sld [smem:[#allocation46_spill]]  ;;  %s3586_s22 = scalar_lea.vmem %s4210_s0, 16 }
  0x44   : > { %p3587_p10 = scmp.ne.s32.totalorder %s4210_s0, %s3586_s22  ;;  %s3593_s20 = scalar_lea.vmem %s4210_s0, 32 }
  0x45   : > { %p3594_p1 = scmp.lt.s32.totalorder %s4210_s0, %s4210_s0  ;;  %p3595_p3 = scmp.lt.s32.totalorder %s3593_s20, %s3586_s22 }
  0x46   : > { %p3589_p11 = pnand %p3587_p10, %p4214_p7 }
  0x47   : > { %p3596_p4 = por %p3595_p3, %p3594_p1 }
  0x48   : > { %p3590_p12 = pneg %p3589_p11 }
  0x49   : > { %3318 = dma.hbm_to_vmem [thread:$0]  (!%p4206_p6), %s4855_s19, 16, %s660_s28, [#allocation11]  }
  0x4a   : > { %p3597_p13 = pnand %p3596_p4, %p3590_p12 }
  0x4c   : > { %3600 = shalt.err (!%p3597_p13)
}
  0x4d   : > { %s4856_s27 = sld [smem:[#allocation48_spill]]  ;;  %s4008_s19 = smov [#allocation16]  }
  0x4e   : > { %s703_s28 = sshll.u32 %s4008_s19, 4  ;;  %s4009_s5 = smov [#allocation19]   ;;  %s704_s28 = int_to_ptr.vmem [resolvable:$true] %s703_s28 }
  0x4f   : > { %s731_s25 = sshll.u32 %s4009_s5, 4  ;;  %s3612_s4 = scalar_lea.vmem %s704_s28, 16  ;;  %s732_s25 = int_to_ptr.vmem [resolvable:$true] %s731_s25 }
  0x50   : > { %p3613_p0 = scmp.ne.s32.totalorder %s704_s28, %s3612_s4  ;;  %s3619_s22 = scalar_lea.vmem %s704_s28, 32 }
  0x51   : > { %p3620_p8 = scmp.lt.s32.totalorder %s704_s28, %s704_s28  ;;  %p3621_p9 = scmp.lt.s32.totalorder %s3619_s22, %s3612_s4 }
  0x52   : > { %p3615_p2 = pnand %p3613_p0, %p4214_p7 }
  0x53   : > { %3324 = dma.hbm_to_vmem [thread:$0]  (!%p4206_p6), %s4856_s27, 16, %s4210_s0, [#allocation14]  }
  0x54   : > { %p3616_p5 = pneg %p3615_p2  ;;  %p3622_p10 = por %p3621_p9, %p3620_p8 }
  0x56   : > { %p3623_p11 = pnand %p3622_p10, %p3616_p5 }
  0x58   : > { %3626 = shalt.err (!%p3623_p11)
}
  0x59   : > { %s4857_s23 = sld [smem:[#allocation50_spill]]  ;;  %s3638_s24 = scalar_lea.vmem %s732_s25, 16 }
  0x5a   : > { %p3639_p12 = scmp.ne.s32.totalorder %s732_s25, %s3638_s24  ;;  %s3645_s27 = scalar_lea.vmem %s732_s25, 32 }
  0x5b   : > { %p3646_p4 = scmp.lt.s32.totalorder %s732_s25, %s732_s25  ;;  %p3647_p13 = scmp.lt.s32.totalorder %s3645_s27, %s3638_s24 }
  0x5c   : > { %p3641_p1 = pnand %p3639_p12, %p4214_p7 }
  0x5d   : > { %p3648_p0 = por %p3647_p13, %p3646_p4 }
  0x5e   : > { %p3642_p3 = pneg %p3641_p1 }
  0x5f   : > { %3330 = dma.hbm_to_vmem [thread:$0]  (!%p4206_p6), %s4857_s23, 16, %s704_s28, [#allocation17]  }
  0x60   : > { %p3649_p2 = pnand %p3648_p0, %p3642_p3 }
  0x62   : > { %3652 = shalt.err (!%p3649_p2)
}
  0x63   : > { %s4858_s12 = sld [smem:[#allocation53_spill]]  ;;  %s4010_s28 = smov [#allocation22]  }
  0x64   : > { %s759_s4 = sshll.u32 %s4010_s28, 4  ;;  %s4011_s22 = smov [#allocation12]   ;;  %s760_s4 = int_to_ptr.vmem [resolvable:$true] %s759_s4 }
  0x65   : > { %s670_s20 = sshll.u32 %s4011_s22, 4  ;;  %s3664_s0 = scalar_lea.vmem %s760_s4, 16  ;;  %s671_s20 = int_to_ptr.vmem [resolvable:$true] %s670_s20 }
  0x66   : > { %p3665_p5 = scmp.ne.s32.totalorder %s760_s4, %s3664_s0  ;;  %s3671_s23 = scalar_lea.vmem %s760_s4, 32 }
  0x67   : > { %p3672_p10 = scmp.lt.s32.totalorder %s760_s4, %s760_s4  ;;  %p3673_p11 = scmp.lt.s32.totalorder %s3671_s23, %s3664_s0 }
  0x68   : > { %p3667_p8 = pnand %p3665_p5, %p4214_p7 }
  0x69   : > { %3336 = dma.hbm_to_vmem [thread:$0]  (!%p4206_p6), %s4858_s12, 16, %s732_s25, [#allocation20]  }
  0x6a   : > { %p3668_p9 = pneg %p3667_p8  ;;  %p3674_p12 = por %p3673_p11, %p3672_p10 }
  0x6c   : > { %p3675_p1 = pnand %p3674_p12, %p3668_p9 }
  0x6e   : > { %3678 = shalt.err (!%p3675_p1)
}
  0x6f   : > { %s4859_s16 = sld [smem:[#allocation55_spill]]  ;;  %s3690_s27 = scalar_lea.vmem %s671_s20, 16 }
  0x70   : > { %p3691_p3 = scmp.ne.s32.totalorder %s671_s20, %s3690_s27  ;;  %s3697_s19 = scalar_lea.vmem %s671_s20, 32 }
  0x71   : > { %p3698_p0 = scmp.lt.s32.totalorder %s671_s20, %s671_s20  ;;  %p3699_p2 = scmp.lt.s32.totalorder %s3697_s19, %s3690_s27 }
  0x72   : > { %p3693_p4 = pnand %p3691_p3, %p4214_p7 }
  0x73   : > { %p3700_p5 = por %p3699_p2, %p3698_p0 }
  0x74   : > { %p3694_p13 = pneg %p3693_p4 }
  0x75   : > { %3342 = dma.hbm_to_vmem [thread:$0]  (!%p4206_p6), %s4859_s16, 16, %s760_s4, [#allocation23]  }
  0x76   : > { %p3701_p8 = pnand %p3700_p5, %p3694_p13 }
  0x78   : > { %3704 = shalt.err (!%p3701_p8)
}
  0x79   : > { %s4860_s22 = sld [smem:[#allocation47_spill]]  ;;  %s4012_s4 = smov [#allocation15]  }
  0x7a   : > { %s692_s0 = sshll.u32 %s4012_s4, 4  ;;  %s4013_s23 = smov [#allocation18]   ;;  %s693_s0 = int_to_ptr.vmem [resolvable:$true] %s692_s0 }
  0x7b   : > { %s717_s24 = sshll.u32 %s4013_s23, 4  ;;  %s3716_s25 = scalar_lea.vmem %s693_s0, 16  ;;  %s718_s24 = int_to_ptr.vmem [resolvable:$true] %s717_s24 }
  0x7c   : > { %p3717_p9 = scmp.ne.s32.totalorder %s693_s0, %s3716_s25  ;;  %s3723_s27 = scalar_lea.vmem %s693_s0, 32 }
  0x7d   : > { %p3724_p12 = scmp.lt.s32.totalorder %s693_s0, %s693_s0  ;;  %p3725_p1 = scmp.lt.s32.totalorder %s3723_s27, %s3716_s25 }
  0x7e   : > { %p3719_p10 = pnand %p3717_p9, %p4214_p7 }
  0x7f   : > { %3321 = dma.hbm_to_vmem [thread:$0]  (!%p4206_p6), %s4860_s22, 16, %s671_s20, [#allocation11]  }
  0x80   : > { %p3720_p11 = pneg %p3719_p10  ;;  %p3726_p3 = por %p3725_p1, %p3724_p12 }
  0x82   : > { %p3727_p4 = pnand %p3726_p3, %p3720_p11 }
  0x84   : > { %3730 = shalt.err (!%p3727_p4)
}
  0x85   : > { %s4861_s5 = sld [smem:[#allocation49_spill]]  ;;  %s3742_s28 = scalar_lea.vmem %s718_s24, 16 }
  0x86   : > { %p3743_p13 = scmp.ne.s32.totalorder %s718_s24, %s3742_s28  ;;  %s3749_s22 = scalar_lea.vmem %s718_s24, 32 }
  0x87   : > { %p3750_p5 = scmp.lt.s32.totalorder %s718_s24, %s718_s24  ;;  %p3751_p8 = scmp.lt.s32.totalorder %s3749_s22, %s3742_s28 }
  0x88   : > { %p3745_p0 = pnand %p3743_p13, %p4214_p7 }
  0x89   : > { %p3752_p9 = por %p3751_p8, %p3750_p5 }
  0x8a   : > { %p3746_p2 = pneg %p3745_p0 }
  0x8b   : > { %3327 = dma.hbm_to_vmem [thread:$0]  (!%p4206_p6), %s4861_s5, 16, %s693_s0, [#allocation14]  }
  0x8c   : > { %p3753_p10 = pnand %p3752_p9, %p3746_p2 }
  0x8e   : > { %3756 = shalt.err (!%p3753_p10)
}
  0x8f   : > { %s4862_s10 = sld [smem:[#allocation52_spill]]  ;;  %s4014_s0 = smov [#allocation21]  }
  0x90   : > { %s745_s25 = sshll.u32 %s4014_s0, 4  ;;  %s4015_s27 = smov [#allocation24]   ;;  %s746_s25 = int_to_ptr.vmem [resolvable:$true] %s745_s25 }
  0x91   : > { %s773_s19 = sshll.u32 %s4015_s27, 4  ;;  %s3768_s20 = scalar_lea.vmem %s746_s25, 16  ;;  %s774_s19 = int_to_ptr.vmem [resolvable:$true] %s773_s19 }
  0x92   : > { %p3769_p11 = scmp.ne.s32.totalorder %s746_s25, %s3768_s20  ;;  %s3775_s5 = scalar_lea.vmem %s746_s25, 32 }
  0x93   : > { %p3776_p3 = scmp.lt.s32.totalorder %s746_s25, %s746_s25  ;;  %p3777_p4 = scmp.lt.s32.totalorder %s3775_s5, %s3768_s20 }
  0x94   : > { %p3771_p12 = pnand %p3769_p11, %p4214_p7 }
  0x95   : > { %3333 = dma.hbm_to_vmem [thread:$0]  (!%p4206_p6), %s4862_s10, 16, %s718_s24, [#allocation17]  }
  0x96   : > { %p3772_p1 = pneg %p3771_p12  ;;  %p3778_p13 = por %p3777_p4, %p3776_p3 }
  0x98   : > { %p3779_p0 = pnand %p3778_p13, %p3772_p1 }
  0x9a   : > { %3782 = shalt.err (!%p3779_p0)
}
  0x9b   : > { %s4863_s14 = sld [smem:[#allocation54_spill]]  ;;  %s3794_s22 = scalar_lea.vmem %s774_s19, 16 }
  0x9c   : > { %p3795_p2 = scmp.ne.s32.totalorder %s774_s19, %s3794_s22  ;;  %s3801_s4 = scalar_lea.vmem %s774_s19, 32 }
  0x9d   : > { %p3802_p9 = scmp.lt.s32.totalorder %s774_s19, %s774_s19  ;;  %p3803_p10 = scmp.lt.s32.totalorder %s3801_s4, %s3794_s22 }
  0x9e   : > { %p3797_p5 = pnand %p3795_p2, %p4214_p7 }
  0x9f   : > { %p3804_p11 = por %p3803_p10, %p3802_p9 }
  0xa0   : > { %p3798_p8 = pneg %p3797_p5 }
  0xa1   : > { %3339 = dma.hbm_to_vmem [thread:$0]  (!%p4206_p6), %s4863_s14, 16, %s746_s25, [#allocation20]  }
  0xa2   : > { %p3805_p12 = pnand %p3804_p11, %p3798_p8 }
  0xa4   : > { %3808 = shalt.err (!%p3805_p12)
}
  0xa5   : > { %s4864_s18 = sld [smem:[#allocation56_spill]]  ;;  %s4016_s25 = smov [#allocation25]  }
  0xa6   : > { %s789_s27 = sshll.u32 %s4016_s25, 4  ;;  %s790_s27 = int_to_ptr.vmem [resolvable:$true] %s789_s27 }
  0xa7   : > { %s3820_s20 = scalar_lea.vmem %s790_s27, 256  ;;  %p3828_p13 = scmp.lt.s32.totalorder %s790_s27, %s790_s27 }
  0xa8   : > { %p3821_p1 = scmp.ne.s32.totalorder %s790_s27, %s3820_s20  ;;  %p3829_p0 = scmp.lt.s32.totalorder %s3820_s20, %s3820_s20 }
  0xaa   : > { %p3823_p3 = pnand %p3821_p1, %p4214_p7  ;;  %p3830_p2 = por %p3829_p0, %p3828_p13 }
  0xab   : > { %3345 = dma.hbm_to_vmem [thread:$0]  (!%p4206_p6), %s4864_s18, 16, %s774_s19, [#allocation23]  }
  0xac   : > { %p3824_p4 = pneg %p3823_p3 }
  0xae   : > { %p3831_p5 = pnand %p3830_p2, %p3824_p4 }
  0xb0   : > { %3834 = shalt.err (!%p3831_p5)
}
  0xb1   : > { %s4017_s5 = smov 64   ;;  %s4018_s8 = smov 4  }
  0xb2   : > { %s4865_s21 = sld [smem:[#allocation59_spill]]  ;;  %s2916_s24 = sadd.s32 4294967294, %s4003_s3  }
  0xb3   : > { %s62_s22 = sadd.s32 1, %s3999_s7  ;;  %s95_s4 = sadd.s32 1, %s3991_s6 }
  0xb4   : > { %p64_p7 = scmp.ge.s32.totalorder %s62_s22, 2  ;;  %p102_p8 = scmp.ne.s32.totalorder %s3991_s6, %s3987_s2 }
  0xb5   : > { %p103_p9 = scmp.eq.s32.totalorder %s4003_s3, 0  ;;  %p108_p11 = scmp.ne.s32.totalorder %s3987_s2, %s3983_s29 }
  0xb6   : > { %s4911_s22 = smov (%p64_p7, %s62_s22), 0  ;;  %p4868_p1 = scmp.eq.s32.totalorder %s4192_s26, 0 }
  0xb7   : > { %4866 = sst [smem:[#allocation40_spill]] %s4911_s22  ;;  %p4316_p10 = por %p103_p9, %p102_p8 }
  0xb8   : > { %3348 = dma.hbm_to_vmem [thread:$0]  (!%p4206_p6), %s4865_s21, 256, %s790_s27, [#allocation26], %s4017_s5, %s4017_s5, %s4018_s8  }
  0xb9   : > { %s92_s9 = ssub.s32 %s3999_s7, %s4911_s22  ;;  %p622_p6 = scmp.eq.s32.totalorder %s4192_s26, 1 }
  0xba   : > { %p93_p12 = scmp.eq.s32.totalorder %s92_s9, 0  ;;  %p4327_p3 = por %p4868_p1, %p108_p11 }
  0xbb   : > { %p4331_p4 = por %p622_p6, %p102_p8  ;;  %p628_p13 = scmp.eq.s32.totalorder %s2916_s24, 1 }
  0xbc   : > { %s4336_s27 = scalar_select %p93_p12, %s3991_s6, %s95_s4  }
  0xbd   : > { %p4338_p0 = por %p628_p13, %p108_p11  ;;  %p3372_p2 = scmp.lt.s32.totalorder %s4003_s3, 2 }
  0xbe   : > { %4871 = sst [smem:[#allocation41_spill]] %s4336_s27  ;;  %s819_s5 = sand.u32 1, %s3991_s6  }
  0xbf   : > { %s2931_s8 = sshll.u32 %s3999_s7, 4  ;;  %s4873_s9 = sld [smem:[#allocation43_spill]] }
  0xc0   : > { %s822_s12 = scalar_lea.vmem [#allocation4], %s819_s5  ;;  %p4350_p5 = pnand %p3372_p2, %p4316_p10 }
  0xc1   : > { %s829_s14 = sshll.u32 %s822_s12, 4  ;;  %s836_s24 = sand.u32 1, %s4003_s3   ;;  %s830_s14 = int_to_ptr.vmem [resolvable:$true] %s829_s14 }
  0xc2   : > { %s2932_s4 = sshll.u32 %s819_s5, 2  ;;  %s820_s18 = scalar_lea.sflag [#allocation5], %s819_s5 }
  0xc3   : > { %p3837_p7 = pneg %p4350_p5  ;;  %s3848_s21 = scalar_lea.vmem %s830_s14, 16 }
  0xc4   : > { %p3849_p8 = scmp.ne.s32.totalorder %s830_s14, %s3848_s21  ;;  %s4019_s12 = smov [#allocation4]  }
  0xc5   : > { %s827_s10 = scalar_lea.hbm %s4873_s9, %s2931_s8  ;;  %s3853_s8 = sshll.u32 %s4019_s12, 4  ;;  %s3854_s8 = int_to_ptr.vmem [resolvable:$false] %s3853_s8 }
  0xc6   : > { %p3851_p9 = pnand %p3849_p8, %p3837_p7  ;;  %s3855_s23 = scalar_lea.vmem %s3854_s8, 32 }
  0xc7   : > { %p3856_p10 = scmp.lt.s32.totalorder %s830_s14, %s3854_s8  ;;  %p3857_p6 = scmp.lt.s32.totalorder %s3855_s23, %s3848_s21 }
  0xc8   : > { %p3852_p11 = pneg %p3851_p9 }
  0xc9   : > { %p3858_p12 = por %p3857_p6, %p3856_p10 }
  0xcb   : > { %p3859_p1 = pnand %p3858_p12, %p3852_p11 }
  0xcd   : > { %3862 = shalt.err (!%p3859_p1)
}
  0xce   : > { %3352 = dma.hbm_to_vmem [thread:$0]  (!%p4350_p5), %s827_s10, 16, %s830_s14, %s820_s18  }
  0xcf   : > { %s2933_s5 = sshll.u32 %s3999_s7, 6  ;;  %s4875_s9 = sld [smem:[#allocation44_spill]] }
  0xd0   : > { %s840_s27 = scalar_lea.vmem [#allocation7], %s2932_s4  ;;  %s837_s12 = scalar_lea.sflag [#allocation8], %s836_s24 }
  0xd1   : > { %s847_s6 = sshll.u32 %s840_s27, 4  ;;  %s4020_s21 = smov [#allocation7]   ;;  %s848_s6 = int_to_ptr.vmem [resolvable:$true] %s847_s6 }
  0xd2   : > { %s3876_s3 = scalar_lea.vmem %s848_s6, 64  ;;  %s3881_s8 = sshll.u32 %s4020_s21, 4  ;;  %s3882_s8 = int_to_ptr.vmem [resolvable:$false] %s3881_s8 }
  0xd3   : > { %p3877_p13 = scmp.ne.s32.totalorder %s848_s6, %s3876_s3  ;;  %s3883_s23 = scalar_lea.vmem %s3882_s8, 128 }
  0xd4   : > { %p3884_p9 = scmp.lt.s32.totalorder %s848_s6, %s3882_s8  ;;  %p3885_p11 = scmp.lt.s32.totalorder %s3883_s23, %s3876_s3 }
  0xd5   : > { %s845_s22 = scalar_lea.hbm %s4875_s9, %s2933_s5  ;;  %p3879_p2 = pnand %p3877_p13, %p3837_p7 }
  0xd6   : > { %p3886_p10 = por %p3885_p11, %p3884_p9 }
  0xd7   : > { %p3880_p8 = pneg %p3879_p2 }
  0xd9   : > { %p3887_p6 = pnand %p3886_p10, %p3880_p8 }
  0xdb   : > { %3890 = shalt.err (!%p3887_p6)
}
  0xdc   : > { %3355 = dma.hbm_to_vmem [thread:$0]  (!%p4350_p5), %s845_s22, 64, %s848_s6, %s837_s12  }
  0xdd   : > { %p4876_p12 = scmp.ne.s32.totalorder %s4851_s1, 0 }
  0xde   : > { %s4374_s10 = sand.u32 (!%p4876_p12), 1, %s3987_s2  }
  0xdf   : > { %856 = sbr.rel (%p4876_p12) target bundleno = 4365 (0x110d), region = 120  ;;  %s859_s14 = scalar_lea.sflag (!%p4876_p12), [#allocation5], %s4374_s10 }
  0xe0   : > { %s861_s18 = scalar_lea.vmem (!%p4876_p12), [#allocation4], %s4374_s10 }
  0xe4   : > { %3942 = dma.done.wait (%p4327_p3), %s859_s14, 16  }
  0xe5   : > { %3944 = vsyncadd (%p4327_p3), %s859_s14, 4294967280  ;;  %s866_s16 = sand.u32 1, %s4192_s26   ;;  %s2935_s6 = sshll.u32 %s4374_s10, 2 }
  0xe6   : > { %s867_s3 = scalar_lea.sflag [#allocation8], %s866_s16  ;;  %s4384_s1 = scalar_lea.vmem [#allocation7], %s2935_s6 }
  0xe7   : > { %3946 = dma.done.wait (%p4327_p3), %s867_s3, 64  }
  0xe8   : > { %3948 = vsyncadd (%p4327_p3), %s867_s3, 4294967232  ;;  %p4877_p5 = scmp.eq.s32.totalorder %s4192_s26, 0 }
  0xea   : > { %3950 = dma.done.wait (%p4877_p5), [#allocation8], 16   ;;  %p4878_p7 = pmov %p4877_p5 }
  0xeb   : > { %p4879_p1 = pmov %p4877_p5 }
  0xec   : > { %3952 = vsyncadd (%p4878_p7), [#allocation8], 4294967280 }
  0xed   : > { %3954 = dma.done.wait (%p4879_p1), [#allocation11], 32   ;;  %p4880_p13 = pmov %p4879_p1 }
  0xee   : > { %p4881_p2 = pmov %p4879_p1 }
  0xef   : > { %3956 = vsyncadd (%p4880_p13), [#allocation11], 4294967264 }
  0xf0   : > { %3958 = dma.done.wait (%p4881_p2), [#allocation14], 32   ;;  %p4882_p8 = pmov %p4879_p1 }
  0xf1   : > { %p4883_p3 = pmov %p4879_p1 }
  0xf2   : > { %3960 = vsyncadd (%p4882_p8), [#allocation14], 4294967264 }
  0xf3   : > { %3962 = dma.done.wait (%p4883_p3), [#allocation17], 32   ;;  %p4884_p9 = pmov %p4879_p1 }
  0xf4   : > { %p4885_p11 = pmov %p4879_p1 }
  0xf5   : > { %3964 = vsyncadd (%p4884_p9), [#allocation17], 4294967264 }
  0xf6   : > { %3966 = dma.done.wait (%p4885_p11), [#allocation20], 32   ;;  %p4886_p10 = pmov %p4879_p1 }
  0xf7   : > { %p4887_p6 = pmov %p4879_p1 }
  0xf8   : > { %3968 = vsyncadd (%p4886_p10), [#allocation20], 4294967264 }
  0xf9   : > { %3970 = dma.done.wait (%p4887_p6), [#allocation23], 32   ;;  %p4888_p12 = pmov %p4879_p1 }
  0xfa   : > { %p4889_p5 = pmov %p4879_p1 }
  0xfb   : > { %3972 = vsyncadd (%p4888_p12), [#allocation23], 4294967264 }
  0xfc   : > { %3974 = dma.done.wait (%p4889_p5), [#allocation26], 256   ;;  %p4890_p7 = pmov %p4879_p1 }
  0xfd   : > { %p993_p1 = scmp.lt.s32.totalorder %s3995_s30, 1  ;;  %s4891_s4 = sld [smem:[#allocation42_spill]]  ;;  %vm1004_vm0 = vcmask 261120   ;;  %v3457_v12 = vld [vmem:[%s4802_s11 + $0x8] sm:$0xff]   ;;  %v4021_v13 = vmov 0.0   ;;  %v3458_v14 = vld [vmem:[%s4802_s11] sm:$0xff]  }
  0xfe   : > { %3976 = vsyncadd (%p4890_p7), [#allocation26], 4294967040  ;;  %3086 = vmatprep.subr.bf16.mxu0 %v4021_v13  ;;  %3110 = vmatprep.subr.bf16.mxu1 %v4021_v13  ;;  %vm4022_vm1 = vmmov 0   ;;  %v2950_v22 = vld [vmem:[#allocation9] ss:$0 sm:$0xff]  ;;  %v3459_v30 = vld [vmem:[%s4808_s17 + $0x8] sm:$0xff]  }
  0xff   : > { %s994_s22 = scalar_select %p993_p1, %s3995_s30, 1  ;;  %3087 = vmatpush3.bf16.msra.mxu0 %v3457_v12  ;;  %3090 = vmatprep.mubr.msk.bf16.mxu0 %vm4022_vm1, %v4021_v13  ;;  %v2951_v24 = vld [vmem:[#allocation10] ss:$0 sm:$0xff]  ;;  %v3023_v26 = vld [vmem:[%s861_s18] ss:$0 sm:$0xff]  ;;  %vm1110_vm2 = vcmask 519168  }
 0x100   : > { %3088 = vmatprep.subr.bf16.mxu0 %v4021_v13  ;;  %3112 = vmatprep.mubr.msk.bf16.mxu1 %vm4022_vm1, %v4021_v13  ;;  %v3460_v33 = vld [vmem:[%s4808_s17] sm:$0xff]   ;;  %v1112_v35 = vld [vmem:[%s4384_s1] sm:$0xf]  ;;  %s4892_s16 = sld [smem:[#allocation51_spill]]  ;;  %vm1305_vm3 = vcmask 64512   ;;  %s4023_s1 = smov 112  }
 0x101   : > { %s2949_s0 = sshll.u32 %s994_s22, 3  ;;  %v2952_v41 = vld [vmem:[#allocation19] ss:$0 sm:$0xff]  ;;  %v2956_v48 = vld [vmem:[#allocation24] ss:$0 sm:$0xff]  ;;  %s4024_s22 = smov 120  }
 0x102   : > { %v2962_v57 = vld [vmem:[#allocation18] ss:$0 sm:$0xff]  ;;  %s4026_s27 = smov 96   ;;  %vm1545_vm4 = vcmask 1043456   ;;  %s4027_s19 = smov 16   ;;  %vm1752_vm5 = vcmask 130048  }
 0x103   : > { %s996_s5 = scalar_lea.vmem %s4891_s4, %s2949_s0  ;;  %3089 = vmatpush3.bf16.msra.mxu0 %v3458_v14  ;;  %s4025_s0 = smov 104   ;;  %vm1754_vm6 = vcmask 195584  }
 0x104   : > { %v4423_v0 = vld [vmem:[%s996_s5] sm:$0xff]  ;;  %3094 = vmatprep.subr.bf16.mxu0 %v4021_v13  ;;  %s4028_s28 = smov 8   ;;  %s4029_s9 = smov 24  }
 0x105   : > { %v1005_v1 = vsel %vm1004_vm0, %v4423_v0, 0.0  ;;  %s4893_s6 = sld [smem:[#allocation57_spill]]  ;;  %s3020_s21 = sshll.u32 %s3995_s30, 7 }
 0x106   : > { %1006 = vadd.xlane.f32.xlu0 %v1005_v1  ;;  %v3461_v36 = vld [vmem:[%s4892_s16 + $0x8] sm:$0xff]   ;;  %v3462_v38 = vld [vmem:[%s4892_s16] sm:$0xff]   ;;  %s4895_s24 = sld [smem:[#allocation58_spill]]  ;;  %s2674_s30 = scalar_lea.sflag [#allocation6], %s4374_s10 }
 0x107   : > { %s4896_s26 = sld [smem:[#allocation61_spill]] }
 0x108   : > { %s4897_s5 = sld [smem:[#allocation60_spill]] }
 0x109   : > { %s4898_s12 = sld [smem:[#allocation62_spill]] }
 0x10a   : > { %1186 = vadd.xlane.f32.xlu0 %v1005_v1 }
 0x18f   : > { %v1007_v2 = vpop.xlane.xlu0 %1006 }
 0x190   : > { %v1009_v3 = vmul.f32 0.03125, %v1007_v2 }
 0x192   : > { %v1010_v4 = vsub.f32 %v4423_v0, %v1009_v3 }
 0x193   : > { %v1187_v5 = vpop.xlane.xlu0 %1186 }
 0x194   : > { %v1189_v6 = vmul.f32 0.03125, %v1187_v5  ;;  %v1011_v7 = vmul.f32 %v1010_v4, %v1010_v4 }
 0x196   : > { %v1190_v8 = vsub.f32 %v4423_v0, %v1189_v6  ;;  %v1012_v9 = vsel %vm1004_vm0, %v1011_v7, 0.0 }
 0x197   : > { %1013 = vadd.xlane.f32.xlu1 %v1012_v9 }
 0x198   : > { %v1191_v10 = vmul.f32 %v1190_v8, %v1190_v8 }
 0x19a   : > { %v1192_v11 = vsel %vm1004_vm0, %v1191_v10, 0.0 }
 0x19b   : > { %1193 = vadd.xlane.f32.xlu1 %v1192_v11 }
 0x220   : > { %v1014_v15 = vpop.xlane.xlu1 %1013 }
 0x221   : > { %v1015_v16 = vmul.f32 0.03125, %v1014_v15 }
 0x223   : > { %v1016_v17 = vadd.f32 1e-06, %v1015_v16 }
 0x224   : > { %v1194_v18 = vpop.xlane.xlu1 %1193 }
 0x225   : > { %3481 = vrsqrt.f32 %v1016_v17  ;;  %v1195_v19 = vmul.f32 0.03125, %v1194_v18 }
 0x227   : > { %v1196_v20 = vadd.f32 1e-06, %v1195_v19 }
 0x229   : > { %3483 = vrsqrt.f32 %v1196_v20 }
 0x232   : > { %v3482_v21 = vpop.eup %3481 }
 0x233   : > { %v1018_v23 = vmul.f32 %v3482_v21, %v1010_v4 }
 0x235   : > { %v1026_v25 = vmul.f32 %v2950_v22, %v1018_v23 }
 0x236   : > { %v3484_v28 = vpop.eup %3483 }
 0x237   : > { %v1034_v27 = vadd.f32 %v2951_v24, %v1026_v25  ;;  %v1198_v31 = vmul.f32 %v3484_v28, %v1190_v8 }
 0x239   : > { %v1041_v29 = vadd.f32 %v3023_v26, %v1034_v27  ;;  %v1206_v34 = vmul.f32 %v2950_v22, %v1198_v31 }
 0x23b   : > { %v1042_v32 = vpack.c.bf16 %v1041_v29, %v1041_v29  ;;  %v1214_v37 = vadd.f32 %v2951_v24, %v1206_v34 }
 0x23d   : > { %3091 = vmatmul.mubr.msk.bf16.vlgmr.msra.gmra.mxu0 %vm1004_vm0, %v1042_v32  ;;  %v1221_v39 = vadd.f32 %v3023_v26, %v1214_v37 }
 0x23e   : > { %3095 = vmatpush3.bf16.msra.mxu0 %v3459_v30  ;;  %3098 = vmatprep.mubr.msk.bf16.mxu0 %vm4022_vm1, %v4021_v13 }
 0x23f   : > { %3096 = vmatprep.subr.bf16.mxu0 %v4021_v13  ;;  %v1222_v40 = vpack.c.bf16 %v1221_v39, %v1221_v39 }
 0x242   : > { %3097 = vmatpush3.bf16.msra.mxu0 %v3460_v33 }
 0x243   : > { %3102 = vmatprep.subr.bf16.mxu0 %v4021_v13 }
 0x245   : > { %3099 = vmatmul.mubr.msk.bf16.vlgmr.msra.gmra.mxu0 %vm1004_vm0, %v1112_v35 }
 0x246   : > { %3103 = vmatpush3.bf16.msra.mxu0 %v3461_v36  ;;  %3106 = vmatprep.mubr.msk.bf16.mxu0 %vm4022_vm1, %v4021_v13 }
 0x247   : > { %3104 = vmatprep.subr.bf16.mxu0 %v4021_v13 }
 0x24a   : > { %3105 = vmatpush3.bf16.msra.mxu0 %v3462_v38 }
 0x24b   : > { %3116 = vmatprep.subr.bf16.mxu0 %v4021_v13 }
 0x24d   : > { %3107 = vmatmul.mubr.msk.bf16.vlgmr.msra.gmra.mxu0 %vm1004_vm0, %v1222_v40 }
 0x24e   : > { %3118 = vmatprep.mubr.msk.bf16.mxu0 %vm4022_vm1, %v4021_v13 }
 0x2fd   : > { %v1103_v42 = vpop.f32.mrf.mxu0 }
 0x2fe   : > { %v1104_v43 = vadd.f32 %v2952_v41, %v1103_v42 }
 0x2ff   : > { %v3092_v44 = vpop.f32.mrf.mxu0 }
 0x300   : > { %v1109_v45 = vpack.c.bf16 %v1104_v43, %v1104_v43 }
 0x301   : > { %v1106_v46 = vpop.f32.mrf.mxu0 }
 0x302   : > { %1111 = vst.msk [vmem:[#allocation2] sm:$0xf] %vm1110_vm2, %v1109_v45 }
 0x303   : > { %v3093_v47 = vpop.f32.mrf.mxu0 }
 0x305   : > { %v1173_v49 = vpop.f32.mrf.mxu0 }
 0x306   : > { %v1174_v50 = vadd.f32 %v2956_v48, %v1173_v49 }
 0x307   : > { %v3100_v51 = vpop.f32.mrf.mxu0 }
 0x308   : > { %v1179_v52 = vpack.c.bf16 %v1174_v50, %v1174_v50 }
 0x309   : > { %v1176_v53 = vpop.f32.mrf.mxu0  ;;  %v4473_v54 = vld [vmem:[#allocation2] sm:$0xf] }
 0x30a   : > { %1180 = vst.msk [vmem:[#allocation3] sm:$0xf] %vm1110_vm2, %v1179_v52  ;;  %1301 = vrot.lane.b32.xlu1 %v4473_v54, %s4023_s1  ;;  %1299 = vrot.lane.b32.xlu0 %v4473_v54, %s4024_s22  ;;  %v1310_v55 = vsel %vm1305_vm3, %v4473_v54, 0  ;;  %v2970_v48 = vcombine.low %v4473_v54, %v4473_v54 }
 0x30b   : > { %v3101_v56 = vpop.f32.mrf.mxu0  ;;  %3111 = vmatpush3.bf16.xpose.msra.mxu1 %v1310_v55 }
 0x30c   : > { %3122 = vmatprep.subr.bf16.mxu1 %v4021_v13 }
 0x30d   : > { %v1283_v58 = vpop.f32.mrf.mxu0 }
 0x30e   : > { %v1284_v59 = vadd.f32 %v2962_v57, %v1283_v58 }
 0x30f   : > { %v3108_v60 = vpop.f32.mrf.mxu0 }
 0x310   : > { %v1290_v61 = vpack.c.bf16 %v1284_v59, %v1284_v59 }
 0x311   : > { %v1286_v62 = vpop.f32.mrf.mxu0 }
 0x312   : > { %1294 = vrot.lane.b32.xlu0 %v1290_v61, %s4023_s1  ;;  %1292 = vrot.lane.b32.xlu1 %v1290_v61, %s4024_s22 }
 0x313   : > { %3113 = vmatmul.mubr.msk.bf16.vlgmr.msra.gmra.mxu1 %vm1305_vm3, %v1290_v61  ;;  %v3109_v63 = vpop.f32.mrf.mxu0 }
 0x314   : > { %3124 = vmatprep.mubr.msk.bf16.mxu1 %vm4022_vm1, %v4021_v13 }
 0x316   : > { %1303 = vrot.lane.b32.xlu1 %v4473_v54, %s4025_s0 }
 0x31a   : > { %1296 = vrot.lane.b32.xlu1 %v1290_v61, %s4025_s0 }
 0x37c   : > { %v4490_v1 = vpop.permute.xlu1 %1301  ;;  %v4492_v2 = vpop.permute.xlu0 %1299 }
 0x37d   : > { %v1402_v3 = vsel %vm1305_vm3, %v4490_v1, 0  ;;  %v1356_v4 = vsel %vm1305_vm3, %v4492_v2, 0  ;;  %v2972_v46 = vcombine.low %v4492_v2, %v4492_v2  ;;  %v2974_v47 = vcombine.low %v4490_v1, %v4490_v1 }
 0x37e   : > { %3117 = vmatpush3.bf16.xpose.msra.mxu0 %v1356_v4  ;;  %3123 = vmatpush3.bf16.xpose.msra.mxu1 %v1402_v3 }
 0x37f   : > { %3128 = vmatprep.subr.bf16.mxu0 %v4021_v13  ;;  %3134 = vmatprep.subr.bf16.mxu1 %v4021_v13 }
 0x384   : > { %v1295_v5 = vpop.permute.xlu0 %1294  ;;  %v1293_v6 = vpop.permute.xlu1 %1292 }
 0x385   : > { %3119 = vmatmul.mubr.msk.bf16.vlgmr.msra.gmra.mxu0 %vm1305_vm3, %v1293_v6  ;;  %3125 = vmatmul.mubr.msk.bf16.vlgmr.msra.gmra.mxu1 %vm1305_vm3, %v1295_v5 }
 0x386   : > { %3130 = vmatprep.mubr.msk.bf16.mxu0 %vm4022_vm1, %v4021_v13  ;;  %3136 = vmatprep.mubr.msk.bf16.mxu1 %vm4022_vm1, %v4021_v13 }
 0x388   : > { %v4506_v7 = vpop.permute.xlu1 %1303 }
 0x389   : > { %v1448_v8 = vsel %vm1305_vm3, %v4506_v7, 0  ;;  %v2976_v55 = vcombine.low %v4506_v7, %v4506_v7 }
 0x38a   : > { %3129 = vmatpush3.bf16.xpose.msra.mxu0 %v1448_v8 }
 0x38b   : > { %3140 = vmatprep.subr.bf16.mxu0 %v4021_v13 }
 0x38c   : > { %v1297_v9 = vpop.permute.xlu1 %1296 }
 0x391   : > { %3131 = vmatmul.mubr.msk.bf16.vlgmr.msra.gmra.mxu0 %vm1305_vm3, %v1297_v9 }
 0x392   : > { %3142 = vmatprep.mubr.msk.bf16.mxu0 %vm4022_vm1, %v4021_v13 }
 0x3d3   : > { %v1346_v10 = vpop.f32.mrf.mxu1 }
 0x3d4   : > { %v1490_v11 = vsel %vm1305_vm3, %v1346_v10, -inf }
 0x3d5   : > { %1491 = vmax.xlane.f32.xlu0 %v1490_v11  ;;  %v3114_v12 = vpop.f32.mrf.mxu1 }
 0x3d7   : > { %v1349_v14 = vpop.f32.mrf.mxu1 }
 0x3d9   : > { %v3115_v15 = vpop.f32.mrf.mxu1 }
 0x445   : > { %v1392_v16 = vpop.f32.mrf.mxu0  ;;  %v1438_v17 = vpop.f32.mrf.mxu1 }
 0x446   : > { %v1496_v18 = vsel %vm1305_vm3, %v1438_v17, -inf  ;;  %v1493_v19 = vsel %vm1305_vm3, %v1392_v16, -inf }
 0x447   : > { %1497 = vmax.xlane.f32.xlu0 %v1496_v18  ;;  %v3126_v20 = vpop.f32.mrf.mxu1  ;;  %1494 = vmax.xlane.f32.xlu1 %v1493_v19  ;;  %v3120_v21 = vpop.f32.mrf.mxu0  ;;  %v3465_v19 = vld [vmem:[%s4804_s13] sm:$0xff]  }
 0x449   : > { %v1395_v22 = vpop.f32.mrf.mxu0  ;;  %v1441_v23 = vpop.f32.mrf.mxu1 }
 0x44b   : > { %v3121_v24 = vpop.f32.mrf.mxu0  ;;  %v3127_v25 = vpop.f32.mrf.mxu1 }
 0x451   : > { %v1484_v26 = vpop.f32.mrf.mxu0 }
 0x452   : > { %v1499_v27 = vsel %vm1305_vm3, %v1484_v26, -inf }
 0x453   : > { %1500 = vmax.xlane.f32.xlu0 %v1499_v27  ;;  %v3132_v28 = vpop.f32.mrf.mxu0 }
 0x455   : > { %v1487_v29 = vpop.f32.mrf.mxu0 }
 0x457   : > { %v3133_v30 = vpop.f32.mrf.mxu0 }
 0x45e   : > { %v1492_v31 = vpop.xlane.xlu0 %1491 }
 0x45f   : > { %v1502_v32 = vsub.f32 %v1346_v10, %v1492_v31 }
 0x461   : > { %v1506_v33 = vmul.f32 1.442695, %v1502_v32 }
 0x463   : > { %3485 = vpow2.f32 %v1506_v33 }
 0x470   : > { %v3486_v34 = vpop.eup %3485 }
 0x471   : > { %v1514_v35 = vsel %vm1305_vm3, %v3486_v34, 0.0 }
 0x472   : > { %1515 = vadd.xlane.f32.xlu0 %v1514_v35 }
 0x4d0   : > { %v1498_v36 = vpop.xlane.xlu0 %1497  ;;  %v1495_v37 = vpop.xlane.xlu1 %1494 }
 0x4d1   : > { %v1504_v38 = vsub.f32 %v1438_v17, %v1498_v36  ;;  %v1503_v39 = vsub.f32 %v1392_v16, %v1495_v37  ;;  %v3464_v17 = vld [vmem:[%s4804_s13 + $0x8] sm:$0xff]  }
 0x4d3   : > { %v1510_v40 = vmul.f32 1.442695, %v1504_v38  ;;  %v1508_v41 = vmul.f32 1.442695, %v1503_v39 }
 0x4d5   : > { %3487 = vpow2.f32 %v1510_v40 }
 0x4d6   : > { %3489 = vpow2.f32 %v1508_v41  ;;  %v4568_v41 = vld [vmem:[#allocation3] sm:$0xf] }
 0x4dc   : > { %v1501_v49 = vpop.xlane.xlu0 %1500 }
 0x4dd   : > { %v1505_v50 = vsub.f32 %v1484_v26, %v1501_v49 }
 0x4df   : > { %v1512_v51 = vmul.f32 1.442695, %v1505_v50 }
 0x4e1   : > { %3491 = vpow2.f32 %v1512_v51 }
 0x4e2   : > { %v3488_v42 = vpop.eup %3487 }
 0x4e3   : > { %v3490_v43 = vpop.eup %3489  ;;  %v1520_v44 = vsel %vm1305_vm3, %v3488_v42, 0.0 }
 0x4e4   : > { %v1517_v45 = vsel %vm1305_vm3, %v3490_v43, 0.0  ;;  %1521 = vadd.xlane.f32.xlu0 %v1520_v44 }
 0x4e5   : > { %1518 = vadd.xlane.f32.xlu1 %v1517_v45  ;;  %v2981_v45 = vld [vmem:[#allocation21] ss:$0 sm:$0xff] }
 0x4ee   : > { %v3492_v52 = vpop.eup %3491 }
 0x4ef   : > { %v1523_v53 = vsel %vm1305_vm3, %v3492_v52, 0.0 }
 0x4f6   : > { %1591 = vrot.lane.b32.xlu1 %v2972_v46, %s4026_s27 }
 0x4fa   : > { %1641 = vrot.lane.b32.xlu1 %v2974_v47, %s4026_s27  ;;  %1540 = vrot.lane.b32.xlu0 %v2970_v48, %s4026_s27 }
 0x4fb   : > { %v1516_v56 = vpop.xlane.xlu0 %1515 }
 0x4fc   : > { %3493 = vrcp.f32 %v1516_v56 }
 0x509   : > { %v3494_v54 = vpop.eup %3493 }
 0x50a   : > { %v1530_v59 = vmul.f32 %v3494_v54, %v3486_v34 }
 0x50c   : > { %v1534_v1 = vpack.c.bf16 %v1530_v59, %v1530_v59 }
 0x51e   : > { %1524 = vadd.xlane.f32.xlu1 %v1523_v53 }
 0x52f   : > { %1691 = vrot.lane.b32.xlu1 %v2976_v55, %s4026_s27 }
 0x56d   : > { %v1522_v57 = vpop.xlane.xlu0 %1521 }
 0x56e   : > { %v1519_v58 = vpop.xlane.xlu1 %1518  ;;  %3495 = vrcp.f32 %v1522_v57  ;;  %v3467_v57 = vld [vmem:[%s4806_s15] sm:$0xff]  }
 0x56f   : > { %3497 = vrcp.f32 %v1519_v58 }
 0x571   : > { %v1541_v60 = vpop.permute.xlu0 %1540 }
 0x572   : > { %v1592_v61 = vpop.permute.xlu1 %1591  ;;  %v1547_v62 = vsel %vm1545_vm4, %v1541_v60, 0 }
 0x573   : > { %v1597_v63 = vsel %vm1545_vm4, %v1592_v61, 0  ;;  %3135 = vmatpush3.bf16.msra.mxu1 %v1547_v62  ;;  %v2982_v62 = vld [vmem:[#allocation15] ss:$0 sm:$0xff] }
 0x574   : > { %3141 = vmatpush3.bf16.msra.mxu0 %v1597_v63  ;;  %3146 = vmatprep.subr.bf16.mxu1 %v4021_v13 }
 0x575   : > { %3152 = vmatprep.subr.bf16.mxu0 %v4021_v13 }
 0x576   : > { %v1642_v2 = vpop.permute.xlu1 %1641  ;;  %3137 = vmatmul.mubr.msk.bf16.vlgmr.msra.gmra.mxu1 %vm1305_vm3, %v1534_v1  ;;  %v2983_v1 = vld [vmem:[#allocation16] ss:$0 sm:$0xff] }
 0x577   : > { %v1647_v3 = vsel %vm1545_vm4, %v1642_v2, 0  ;;  %3148 = vmatprep.mubr.msk.bf16.mxu1 %vm4022_vm1, %v4021_v13 }
 0x578   : > { %3147 = vmatpush3.bf16.msra.mxu1 %v1647_v3 }
 0x579   : > { %3158 = vmatprep.subr.bf16.mxu1 %v4021_v13 }
 0x57b   : > { %v3496_v4 = vpop.eup %3495 }
 0x57c   : > { %v3498_v5 = vpop.eup %3497  ;;  %v1532_v6 = vmul.f32 %v3496_v4, %v3488_v42 }
 0x57d   : > { %v1531_v7 = vmul.f32 %v3498_v5, %v3490_v43  ;;  %v1941_v43 = vsel %vm1305_vm3, %v4568_v41, 0 }
 0x57e   : > { %v1536_v8 = vpack.c.bf16 %v1532_v6, %v1532_v6 }
 0x57f   : > { %v1535_v9 = vpack.c.bf16 %v1531_v7, %v1531_v7  ;;  %v2984_v7 = vld [vmem:[#allocation22] ss:$0 sm:$0xff] }
 0x580   : > { %3149 = vmatmul.mubr.msk.bf16.vlgmr.msra.gmra.mxu1 %vm1305_vm3, %v1536_v8 }
 0x581   : > { %3143 = vmatmul.mubr.msk.bf16.vlgmr.msra.gmra.mxu0 %vm1305_vm3, %v1535_v9  ;;  %3162 = vmatprep.mubr.msk.bf16.mxu1 %vm4022_vm1, %v4021_v13 }
 0x582   : > { %3154 = vmatprep.mubr.msk.bf16.mxu0 %vm4022_vm1, %v4021_v13  ;;  %3159 = vmatpush3.bf16.msra.mxu1 %v3464_v17 }
 0x583   : > { %3160 = vmatprep.subr.bf16.mxu1 %v4021_v13 }
 0x586   : > { %3161 = vmatpush3.bf16.msra.mxu1 %v3465_v19 }
 0x587   : > { %3174 = vmatprep.subr.bf16.mxu1 %v4021_v13 }
 0x5a7   : > { %v1525_v10 = vpop.xlane.xlu1 %1524 }
 0x5a8   : > { %3499 = vrcp.f32 %v1525_v10 }
 0x5ab   : > { %v1692_v11 = vpop.permute.xlu1 %1691 }
 0x5ac   : > { %v1697_v12 = vsel %vm1545_vm4, %v1692_v11, 0 }
 0x5ad   : > { %3153 = vmatpush3.bf16.msra.mxu0 %v1697_v12 }
 0x5ae   : > { %3166 = vmatprep.subr.bf16.mxu0 %v4021_v13 }
 0x5b5   : > { %v3500_v14 = vpop.eup %3499 }
 0x5b6   : > { %v1533_v15 = vmul.f32 %v3500_v14, %v3492_v52 }
 0x5b8   : > { %v1537_v16 = vpack.c.bf16 %v1533_v15, %v1533_v15 }
 0x5ba   : > { %3155 = vmatmul.mubr.msk.bf16.vlgmr.msra.gmra.mxu0 %vm1305_vm3, %v1537_v16 }
 0x5bb   : > { %3170 = vmatprep.mubr.msk.bf16.mxu0 %vm4022_vm1, %v4021_v13 }
 0x636   : > { %v1583_v18 = vpop.f32.mrf.mxu1 }
 0x638   : > { %v3138_v20 = vpop.f32.mrf.mxu1 }
 0x63a   : > { %v1586_v21 = vpop.f32.mrf.mxu1 }
 0x63c   : > { %v3139_v22 = vpop.f32.mrf.mxu1 }
 0x640   : > { %v1683_v23 = vpop.f32.mrf.mxu1 }
 0x641   : > { %v1633_v24 = vpop.f32.mrf.mxu0  ;;  %1744 = vrot.lane.b32.xlu1 %v1683_v23, %s4027_s19 }
 0x642   : > { %1740 = vrot.lane.b32.xlu0 %v1633_v24, %s4028_s28  ;;  %v3150_v25 = vpop.f32.mrf.mxu1 }
 0x643   : > { %v3144_v26 = vpop.f32.mrf.mxu0 }
 0x644   : > { %v1686_v27 = vpop.f32.mrf.mxu1 }
 0x645   : > { %v1636_v28 = vpop.f32.mrf.mxu0  ;;  %v2992_v27 = vcombine.low %v4568_v41, %v4568_v41 }
 0x646   : > { %v3151_v29 = vpop.f32.mrf.mxu1 }
 0x647   : > { %v3145_v30 = vpop.f32.mrf.mxu0 }
 0x67a   : > { %v1733_v31 = vpop.f32.mrf.mxu0 }
 0x67b   : > { %1748 = vrot.lane.b32.xlu0 %v1733_v31, %s4029_s9 }
 0x67c   : > { %v3156_v32 = vpop.f32.mrf.mxu0 }
 0x67e   : > { %v1736_v33 = vpop.f32.mrf.mxu0 }
 0x680   : > { %v3157_v34 = vpop.f32.mrf.mxu0 }
 0x6b3   : > { %v1745_v36 = vpop.permute.xlu1 %1744 }
 0x6b4   : > { %v1741_v35 = vpop.permute.xlu0 %1740 }
 0x6b5   : > { %v1751_v37 = vsel %vm1305_vm3, %v1583_v18, %v1741_v35 }
 0x6b6   : > { %v1753_v38 = vsel %vm1752_vm5, %v1751_v37, %v1745_v36 }
 0x6ed   : > { %v1749_v39 = vpop.permute.xlu0 %1748 }
 0x6ee   : > { %v1755_v40 = vsel %vm1754_vm6, %v1753_v38, %v1749_v39 }
 0x6ef   : > { %v1756_v42 = vpack.c.bf16 %v1755_v40, %v1755_v40 }
 0x6f1   : > { %3163 = vmatmul.mubr.msk.bf16.vlgmr.msra.gmra.mxu1 %vm1004_vm0, %v1756_v42 }
 0x6f2   : > { %3175 = vmatpush3.bf16.xpose.msra.mxu1 %v1941_v43  ;;  %3176 = vmatprep.mubr.msk.bf16.mxu1 %vm4022_vm1, %v4021_v13 }
 0x6f3   : > { %3186 = vmatprep.subr.bf16.mxu1 %v4021_v13 }
 0x7b1   : > { %v1810_v44 = vpop.f32.mrf.mxu1 }
 0x7b2   : > { %v1816_v46 = vadd.f32 %v1810_v44, %v4423_v0  ;;  %v3466_v0 = vld [vmem:[%s4806_s15 + $0x8] sm:$0xff]  }
 0x7b3   : > { %v3164_v47 = vpop.f32.mrf.mxu1  ;;  %3167 = vmatpush3.bf16.msra.mxu0 %v3466_v0 }
 0x7b4   : > { %v4577_v48 = vadd.f32 %v2981_v45, %v1816_v46  ;;  %3168 = vmatprep.subr.bf16.mxu0 %v4021_v13 }
 0x7b5   : > { %v1813_v49 = vpop.f32.mrf.mxu1 }
 0x7b6   : > { %v1825_v50 = vsel %vm1004_vm0, %v4577_v48, 0.0 }
 0x7b7   : > { %1826 = vadd.xlane.f32.xlu1 %v1825_v50  ;;  %v3165_v51 = vpop.f32.mrf.mxu1  ;;  %3169 = vmatpush3.bf16.msra.mxu0 %v3467_v57 }
 0x7b8   : > { %3180 = vmatprep.subr.bf16.mxu0 %v4021_v13 }
 0x7c8   : > { %1933 = vrot.lane.b32.xlu1 %v4568_v41, %s4023_s1 }
 0x840   : > { %v1827_v52 = vpop.xlane.xlu1 %1826 }
 0x841   : > { %v1828_v53 = vmul.f32 0.03125, %v1827_v52 }
 0x843   : > { %v1829_v55 = vsub.f32 %v4577_v48, %v1828_v53 }
 0x844   : > { %v4605_v11 = vpop.permute.xlu1 %1933 }
 0x845   : > { %v1830_v56 = vmul.f32 %v1829_v55, %v1829_v55  ;;  %v2033_v15 = vsel %vm1305_vm3, %v4605_v11, 0 }
 0x847   : > { %v1831_v54 = vsel %vm1004_vm0, %v1830_v56, 0.0 }
 0x848   : > { %1832 = vadd.xlane.f32.xlu0 %v1831_v54 }
 0x85e   : > { %1931 = vrot.lane.b32.xlu0 %v4568_v41, %s4024_s22 }
 0x862   : > { %1935 = vrot.lane.b32.xlu0 %v4568_v41, %s4025_s0 }
 0x8d1   : > { %v1833_v58 = vpop.xlane.xlu0 %1832 }
 0x8d2   : > { %v1834_v59 = vmul.f32 0.03125, %v1833_v58 }
 0x8d4   : > { %v1835_v60 = vadd.f32 1e-06, %v1834_v59 }
 0x8d5   : > { %v4597_v4 = vpop.permute.xlu0 %1931 }
 0x8d6   : > { %3501 = vrsqrt.f32 %v1835_v60  ;;  %v1987_v6 = vsel %vm1305_vm3, %v4597_v4, 0 }
 0x8d9   : > { %v4616_v17 = vpop.permute.xlu0 %1935 }
 0x8da   : > { %v2079_v19 = vsel %vm1305_vm3, %v4616_v17, 0 }
 0x8e3   : > { %v3502_v61 = vpop.eup %3501 }
 0x8e4   : > { %v1837_v63 = vmul.f32 %v3502_v61, %v1829_v55 }
 0x8e6   : > { %v1845_v2 = vmul.f32 %v2982_v62, %v1837_v63 }
 0x8e8   : > { %v1853_v3 = vadd.f32 %v2983_v1, %v1845_v2  ;;  %v2996_v2 = vcombine.low %v4605_v11, %v4605_v11 }
 0x8ea   : > { %v1854_v5 = vpack.c.bf16 %v1853_v3, %v1853_v3  ;;  %v2998_v3 = vcombine.low %v4616_v17, %v4616_v17 }
 0x8ec   : > { %3171 = vmatmul.mubr.msk.bf16.vlgmr.msra.gmra.mxu0 %vm1004_vm0, %v1854_v5 }
 0x8ed   : > { %3181 = vmatpush3.bf16.xpose.msra.mxu0 %v1987_v6  ;;  %3182 = vmatprep.mubr.msk.bf16.mxu0 %vm4022_vm1, %v4021_v13  ;;  %v2994_v6 = vcombine.low %v4597_v4, %v4597_v4 }
 0x8ee   : > { %3192 = vmatprep.subr.bf16.mxu0 %v4021_v13 }
 0x9ac   : > { %v1915_v8 = vpop.f32.mrf.mxu0 }
 0x9ad   : > { %v1916_v9 = vadd.f32 %v2984_v7, %v1915_v8 }
 0x9ae   : > { %v3172_v10 = vpop.f32.mrf.mxu0 }
 0x9af   : > { %v1922_v12 = vpack.c.bf16 %v1916_v9, %v1916_v9 }
 0x9b0   : > { %v1918_v14 = vpop.f32.mrf.mxu0 }
 0x9b1   : > { %1928 = vrot.lane.b32.xlu0 %v1922_v12, %s4025_s0  ;;  %1924 = vrot.lane.b32.xlu1 %v1922_v12, %s4024_s22 }
 0x9b2   : > { %3177 = vmatmul.mubr.msk.bf16.vlgmr.msra.gmra.mxu1 %vm1305_vm3, %v1922_v12  ;;  %v3173_v16 = vpop.f32.mrf.mxu0 }
 0x9b3   : > { %3187 = vmatpush3.bf16.xpose.msra.mxu1 %v2033_v15  ;;  %3188 = vmatprep.mubr.msk.bf16.mxu1 %vm4022_vm1, %v4021_v13 }
 0x9b4   : > { %3198 = vmatprep.subr.bf16.mxu1 %v4021_v13 }
 0x9b5   : > { %1926 = vrot.lane.b32.xlu1 %v1922_v12, %s4023_s1  ;;  %s4894_s1 = smov %s4893_s6 }
 0xa23   : > { %v1925_v18 = vpop.permute.xlu1 %1924  ;;  %v1929_v21 = vpop.permute.xlu0 %1928 }
 0xa24   : > { %3183 = vmatmul.mubr.msk.bf16.vlgmr.msra.gmra.mxu0 %vm1305_vm3, %v1925_v18 }
 0xa25   : > { %3193 = vmatpush3.bf16.xpose.msra.mxu0 %v2079_v19  ;;  %3194 = vmatprep.mubr.msk.bf16.mxu0 %vm4022_vm1, %v4021_v13 }
 0xa26   : > { %3204 = vmatprep.subr.bf16.mxu0 %v4021_v13 }
 0xa27   : > { %v1927_v20 = vpop.permute.xlu1 %1926 }
 0xa28   : > { %3189 = vmatmul.mubr.msk.bf16.vlgmr.msra.gmra.mxu1 %vm1305_vm3, %v1927_v20 }
 0xa29   : > { %3200 = vmatprep.mubr.msk.bf16.mxu1 %vm4022_vm1, %v4021_v13 }
 0xa2c   : > { %3195 = vmatmul.mubr.msk.bf16.vlgmr.msra.gmra.mxu0 %vm1305_vm3, %v1929_v21 }
 0xa2d   : > { %3206 = vmatprep.mubr.msk.bf16.mxu0 %vm4022_vm1, %v4021_v13 }
 0xa72   : > { %v1977_v22 = vpop.f32.mrf.mxu1 }
 0xa73   : > { %v2121_v23 = vsel %vm1305_vm3, %v1977_v22, -inf }
 0xa74   : > { %2122 = vmax.xlane.f32.xlu1 %v2121_v23  ;;  %v3178_v24 = vpop.f32.mrf.mxu1 }
 0xa76   : > { %v1980_v25 = vpop.f32.mrf.mxu1 }
 0xa78   : > { %v3179_v26 = vpop.f32.mrf.mxu1 }
 0xa85   : > { %2171 = vrot.lane.b32.xlu1 %v2992_v27, %s4026_s27 }
 0xae4   : > { %v2023_v28 = vpop.f32.mrf.mxu0 }
 0xae5   : > { %v2124_v29 = vsel %vm1305_vm3, %v2023_v28, -inf }
 0xae6   : > { %2125 = vmax.xlane.f32.xlu0 %v2124_v29  ;;  %v3184_v30 = vpop.f32.mrf.mxu0 }
 0xae8   : > { %v2026_v31 = vpop.f32.mrf.mxu0  ;;  %v2069_v32 = vpop.f32.mrf.mxu1 }
 0xae9   : > { %v2127_v33 = vsel %vm1305_vm3, %v2069_v32, -inf }
 0xaea   : > { %v3190_v34 = vpop.f32.mrf.mxu1  ;;  %2128 = vmax.xlane.f32.xlu0 %v2127_v33  ;;  %v3185_v35 = vpop.f32.mrf.mxu0  ;;  %v3470_v33 = vld [vmem:[%s4894_s1] sm:$0xff]  }
 0xaec   : > { %v2072_v36 = vpop.f32.mrf.mxu1  ;;  %v2115_v37 = vpop.f32.mrf.mxu0 }
 0xaed   : > { %v2130_v38 = vsel %vm1305_vm3, %v2115_v37, -inf }
 0xaee   : > { %v3191_v39 = vpop.f32.mrf.mxu1  ;;  %2131 = vmax.xlane.f32.xlu0 %v2130_v38  ;;  %v3196_v40 = vpop.f32.mrf.mxu0 }
 0xaf0   : > { %v2118_v41 = vpop.f32.mrf.mxu0 }
 0xaf2   : > { %v3197_v42 = vpop.f32.mrf.mxu0 }
 0xafd   : > { %v2123_v43 = vpop.xlane.xlu1 %2122 }
 0xafe   : > { %v2133_v44 = vsub.f32 %v1977_v22, %v2123_v43 }
 0xb00   : > { %v2137_v45 = vmul.f32 1.442695, %v2133_v44 }
 0xb01   : > { %v2172_v46 = vpop.permute.xlu1 %2171 }
 0xb02   : > { %3503 = vpow2.f32 %v2137_v45  ;;  %v2177_v47 = vsel %vm1545_vm4, %v2172_v46, 0 }
 0xb03   : > { %3199 = vmatpush3.bf16.msra.mxu1 %v2177_v47 }
 0xb04   : > { %3210 = vmatprep.subr.bf16.mxu1 %v4021_v13 }
 0xb0f   : > { %v3504_v49 = vpop.eup %3503 }
 0xb10   : > { %v2145_v50 = vsel %vm1305_vm3, %v3504_v49, 0.0 }
 0xb11   : > { %2146 = vadd.xlane.f32.xlu1 %v2145_v50 }
 0xb6f   : > { %v2126_v51 = vpop.xlane.xlu0 %2125 }
 0xb70   : > { %v2134_v52 = vsub.f32 %v2023_v28, %v2126_v51 }
 0xb72   : > { %v2139_v53 = vmul.f32 1.442695, %v2134_v52 }
 0xb73   : > { %v2129_v55 = vpop.xlane.xlu0 %2128 }
 0xb74   : > { %3505 = vpow2.f32 %v2139_v53  ;;  %v2135_v56 = vsub.f32 %v2069_v32, %v2129_v55  ;;  %v3469_v32 = vld [vmem:[%s4893_s6 + $0x8] sm:$0xff]   ;;  %s4899_s6 = sld [smem:[#allocation63_spill]] }
 0xb76   : > { %v2141_v54 = vmul.f32 1.442695, %v2135_v56  ;;  %v3003_v56 = vld [vmem:[%s4895_s24] ss:$0 sm:$0xff] }
 0xb77   : > { %v2132_v0 = vpop.xlane.xlu0 %2131 }
 0xb78   : > { %3507 = vpow2.f32 %v2141_v54  ;;  %v2136_v57 = vsub.f32 %v2115_v37, %v2132_v0 }
 0xb7a   : > { %v2143_v58 = vmul.f32 1.442695, %v2136_v57  ;;  %s4900_s22 = smov %s4899_s6  ;;  %s4742_s3 = scalar_lea.hbm %s4899_s6, %s3020_s21 }
 0xb7c   : > { %3509 = vpow2.f32 %v2143_v58 }
 0xb81   : > { %v3506_v59 = vpop.eup %3505 }
 0xb82   : > { %v2148_v60 = vsel %vm1305_vm3, %v3506_v59, 0.0 }
 0xb83   : > { %2149 = vadd.xlane.f32.xlu0 %v2148_v60 }
 0xb85   : > { %v3508_v61 = vpop.eup %3507 }
 0xb86   : > { %v2151_v62 = vsel %vm1305_vm3, %v3508_v61, 0.0 }
 0xb87   : > { %2152 = vadd.xlane.f32.xlu1 %v2151_v62 }
 0xb89   : > { %v3510_v63 = vpop.eup %3509 }
 0xb8a   : > { %v2154_v1 = vsel %vm1305_vm3, %v3510_v63, 0.0 }
 0xb8b   : > { %2155 = vadd.xlane.f32.xlu0 %v2154_v1 }
 0xb98   : > { %2271 = vrot.lane.b32.xlu1 %v2996_v2, %s4026_s27 }
 0xb9a   : > { %v2147_v5 = vpop.xlane.xlu1 %2146 }
 0xb9b   : > { %3511 = vrcp.f32 %v2147_v5 }
 0xb9c   : > { %2321 = vrot.lane.b32.xlu1 %v2998_v3, %s4026_s27  ;;  %v3471_v3 = vld [vmem:[#allocation25 + $0x8] sm:$0xff]  }
 0xba1   : > { %2221 = vrot.lane.b32.xlu0 %v2994_v6, %s4026_s27  ;;  %s4030_s27 = smov [#allocation27]  }
 0xba2   : > { %s3895_s24 = sshll.u32 %s4030_s27, 4  ;;  %s3896_s24 = int_to_ptr.vmem [resolvable:$false] %s3895_s24 }
 0xba3   : > { %s3897_s4 = scalar_lea.vmem %s3896_s24, 256 }
 0xba8   : > { %v3512_v7 = vpop.eup %3511 }
 0xba9   : > { %v2161_v8 = vmul.f32 %v3512_v7, %v3504_v49 }
 0xbab   : > { %v2165_v9 = vpack.c.bf16 %v2161_v8, %v2161_v8 }
 0xbad   : > { %3201 = vmatmul.mubr.msk.bf16.vlgmr.msra.gmra.mxu1 %vm1305_vm3, %v2165_v9  ;;  %v3004_v9 = vld [vmem:[#allocation12] ss:$0 sm:$0xff] }
 0xbae   : > { %3212 = vmatprep.mubr.msk.bf16.mxu1 %vm4022_vm1, %v4021_v13 }
 0xc0c   : > { %v2150_v10 = vpop.xlane.xlu0 %2149 }
 0xc0d   : > { %3513 = vrcp.f32 %v2150_v10 }
 0xc10   : > { %v2153_v11 = vpop.xlane.xlu1 %2152 }
 0xc11   : > { %3515 = vrcp.f32 %v2153_v11  ;;  %v3005_v11 = vld [vmem:[#allocation13] ss:$0 sm:$0xff] }
 0xc14   : > { %v2272_v12 = vpop.permute.xlu1 %2271  ;;  %v2156_v14 = vpop.xlane.xlu0 %2155 }
 0xc15   : > { %v2277_v15 = vsel %vm1545_vm4, %v2272_v12, 0  ;;  %3517 = vrcp.f32 %v2156_v14 }
 0xc16   : > { %3211 = vmatpush3.bf16.msra.mxu1 %v2277_v15 }
 0xc17   : > { %3222 = vmatprep.subr.bf16.mxu1 %v4021_v13 }
 0xc18   : > { %v2222_v4 = vpop.permute.xlu0 %2221  ;;  %v2322_v19 = vpop.permute.xlu1 %2321 }
 0xc19   : > { %v2227_v16 = vsel %vm1545_vm4, %v2222_v4, 0  ;;  %v2327_v22 = vsel %vm1545_vm4, %v2322_v19, 0  ;;  %v3473_v4 = vld [vmem:[%s4896_s26 + $0x38] sm:$0xff]  }
 0xc1a   : > { %v3514_v17 = vpop.eup %3513  ;;  %3205 = vmatpush3.bf16.msra.mxu0 %v2227_v16  ;;  %v3474_v16 = vld [vmem:[%s4896_s26 + $0x30] sm:$0xff]   ;;  %v3477_v19 = vld [vmem:[%s4896_s26 + $0x18] sm:$0xff]  }
 0xc1b   : > { %3216 = vmatprep.subr.bf16.mxu0 %v4021_v13  ;;  %v2162_v18 = vmul.f32 %v3514_v17, %v3506_v59  ;;  %v3475_v17 = vld [vmem:[%s4896_s26 + $0x28] sm:$0xff]  }
 0xc1d   : > { %v2166_v20 = vpack.c.bf16 %v2162_v18, %v2162_v18  ;;  %v3476_v18 = vld [vmem:[%s4896_s26 + $0x20] sm:$0xff]  }
 0xc1e   : > { %v3516_v21 = vpop.eup %3515 }
 0xc1f   : > { %3207 = vmatmul.mubr.msk.bf16.vlgmr.msra.gmra.mxu0 %vm1305_vm3, %v2166_v20  ;;  %v2163_v23 = vmul.f32 %v3516_v21, %v3508_v61  ;;  %v3478_v20 = vld [vmem:[%s4896_s26 + $0x10] sm:$0xff]   ;;  %v3479_v21 = vld [vmem:[%s4896_s26 + $0x8] sm:$0xff]  }
 0xc20   : > { %3217 = vmatpush3.bf16.msra.mxu0 %v2327_v22  ;;  %3218 = vmatprep.mubr.msk.bf16.mxu0 %vm4022_vm1, %v4021_v13  ;;  %v3480_v22 = vld [vmem:[%s4896_s26] sm:$0xff]  }
 0xc21   : > { %v2167_v24 = vpack.c.bf16 %v2163_v23, %v2163_v23  ;;  %3230 = vmatprep.subr.bf16.mxu0 %v4021_v13  ;;  %v3006_v23 = vld [vmem:[%s4897_s5] ss:$0 sm:$0xff] }
 0xc22   : > { %v3518_v25 = vpop.eup %3517 }
 0xc23   : > { %3213 = vmatmul.mubr.msk.bf16.vlgmr.msra.gmra.mxu1 %vm1305_vm3, %v2167_v24  ;;  %v2164_v26 = vmul.f32 %v3518_v25, %v3510_v63 }
 0xc24   : > { %3226 = vmatprep.mubr.msk.bf16.mxu1 %vm4022_vm1, %v4021_v13  ;;  %3223 = vmatpush3.bf16.msra.mxu1 %v3469_v32 }
 0xc25   : > { %v2168_v27 = vpack.c.bf16 %v2164_v26, %v2164_v26  ;;  %3224 = vmatprep.subr.bf16.mxu1 %v4021_v13 }
 0xc27   : > { %3219 = vmatmul.mubr.msk.bf16.vlgmr.msra.gmra.mxu0 %vm1305_vm3, %v2168_v27 }
 0xc28   : > { %3234 = vmatprep.mubr.msk.bf16.mxu0 %vm4022_vm1, %v4021_v13  ;;  %3225 = vmatpush3.bf16.msra.mxu1 %v3470_v33 }
 0xc29   : > { %3238 = vmatprep.subr.bf16.mxu1 %v4021_v13  ;;  %3231 = vmatpush3.bf16.msra.mxu0 %v3471_v3 }
 0xc2a   : > { %3232 = vmatprep.subr.bf16.mxu0 %v4021_v13 }
 0xc6d   : > { %v2213_v28 = vpop.f32.mrf.mxu1 }
 0xc6f   : > { %v3202_v29 = vpop.f32.mrf.mxu1 }
 0xc71   : > { %v2216_v30 = vpop.f32.mrf.mxu1 }
 0xc73   : > { %v3203_v31 = vpop.f32.mrf.mxu1 }
 0xcdf   : > { %v2263_v34 = vpop.f32.mrf.mxu0 }
 0xce0   : > { %2370 = vrot.lane.b32.xlu1 %v2263_v34, %s4028_s28 }
 0xce1   : > { %v3208_v35 = vpop.f32.mrf.mxu0 }
 0xce3   : > { %v2266_v36 = vpop.f32.mrf.mxu0  ;;  %v2313_v37 = vpop.f32.mrf.mxu1 }
 0xce4   : > { %2374 = vrot.lane.b32.xlu0 %v2313_v37, %s4027_s19  ;;  %s2948_s19 = sshll.u32 %s4374_s10, 3 }
 0xce5   : > { %v3209_v38 = vpop.f32.mrf.mxu0  ;;  %v3214_v39 = vpop.f32.mrf.mxu1  ;;  %s992_s8 = scalar_lea.vmem [#allocation27], %s2948_s19 }
 0xce6   : > { %v3018_v39 = vld [vmem:[%s4898_s12] ss:$0 sm:$0xff]  ;;  %s2688_s23 = sshll.u32 %s992_s8, 4  ;;  %s4744_s23 = int_to_ptr.vmem [resolvable:$true] %s2688_s23 }
 0xce7   : > { %v2316_v40 = vpop.f32.mrf.mxu1  ;;  %v2363_v41 = vpop.f32.mrf.mxu0  ;;  %s3891_s0 = scalar_lea.vmem %s4744_s23, 128  ;;  %p3898_p3 = scmp.lt.s32.totalorder %s4744_s23, %s3896_s24 }
 0xce8   : > { %2378 = vrot.lane.b32.xlu1 %v2363_v41, %s4029_s9  ;;  %p3892_p13 = scmp.ne.s32.totalorder %s4744_s23, %s3891_s0  ;;  %p3899_p9 = scmp.lt.s32.totalorder %s3897_s4, %s3891_s0 }
 0xce9   : > { %v3215_v42 = vpop.f32.mrf.mxu1  ;;  %v3220_v43 = vpop.f32.mrf.mxu0 }
 0xcea   : > { %p3893_p2 = pnand %p3892_p13, %p4331_p4  ;;  %p3900_p11 = por %p3899_p9, %p3898_p3 }
 0xceb   : > { %v2366_v44 = vpop.f32.mrf.mxu0 }
 0xcec   : > { %p3894_p8 = pneg %p3893_p2 }
 0xced   : > { %v3221_v45 = vpop.f32.mrf.mxu0 }
 0xcee   : > { %p3901_p10 = pnand %p3900_p11, %p3894_p8 }
 0xd52   : > { %v2371_v46 = vpop.permute.xlu1 %2370 }
 0xd53   : > { %v2381_v49 = vsel %vm1305_vm3, %v2213_v28, %v2371_v46 }
 0xd56   : > { %v2375_v47 = vpop.permute.xlu0 %2374 }
 0xd57   : > { %v2382_v50 = vsel %vm1752_vm5, %v2381_v49, %v2375_v47 }
 0xd5a   : > { %v2379_v51 = vpop.permute.xlu1 %2378 }
 0xd5b   : > { %v2383_v52 = vsel %vm1754_vm6, %v2382_v50, %v2379_v51 }
 0xd5c   : > { %v2384_v53 = vpack.c.bf16 %v2383_v52, %v2383_v52 }
 0xd5e   : > { %3227 = vmatmul.mubr.msk.bf16.vlgmr.msra.gmra.mxu1 %vm1004_vm0, %v2384_v53 }
 0xd5f   : > { %3254 = vmatprep.mubr.msk.bf16.mxu1 %vm4022_vm1, %v4021_v13  ;;  %3239 = vmatpush3.bf16.msra.mxu1 %v3473_v4 }
 0xd60   : > { %3240 = vmatprep.subr.bf16.mxu1 %v4021_v13 }
 0xd63   : > { %3241 = vmatpush3.bf16.msra.mxu1 %v3474_v16 }
 0xd64   : > { %3242 = vmatprep.subr.bf16.mxu1 %v4021_v13 }
 0xd67   : > { %3243 = vmatpush3.bf16.msra.mxu1 %v3475_v17 }
 0xd68   : > { %3244 = vmatprep.subr.bf16.mxu1 %v4021_v13 }
 0xd6b   : > { %3245 = vmatpush3.bf16.msra.mxu1 %v3476_v18 }
 0xd6c   : > { %3246 = vmatprep.subr.bf16.mxu1 %v4021_v13 }
 0xd6f   : > { %3247 = vmatpush3.bf16.msra.mxu1 %v3477_v19 }
 0xd70   : > { %3248 = vmatprep.subr.bf16.mxu1 %v4021_v13 }
 0xd73   : > { %3249 = vmatpush3.bf16.msra.mxu1 %v3478_v20 }
 0xd74   : > { %3250 = vmatprep.subr.bf16.mxu1 %v4021_v13 }
 0xd77   : > { %3251 = vmatpush3.bf16.msra.mxu1 %v3479_v21 }
 0xd78   : > { %3252 = vmatprep.subr.bf16.mxu1 %v4021_v13 }
 0xd7b   : > { %3253 = vmatpush3.bf16.msra.mxu1 %v3480_v22 }
 0xe1e   : > { %v2438_v55 = vpop.f32.mrf.mxu1 }
 0xe1f   : > { %v2444_v54 = vadd.f32 %v2438_v55, %v4577_v48  ;;  %v3472_v48 = vld [vmem:[#allocation25] sm:$0xff]  }
 0xe20   : > { %v3228_v0 = vpop.f32.mrf.mxu1  ;;  %3233 = vmatpush3.bf16.msra.mxu0 %v3472_v48 }
 0xe21   : > { %v4691_v57 = vadd.f32 %v3003_v56, %v2444_v54 }
 0xe22   : > { %v2441_v58 = vpop.f32.mrf.mxu1 }
 0xe23   : > { %v2453_v59 = vsel %vm1004_vm0, %v4691_v57, 0.0 }
 0xe24   : > { %2454 = vadd.xlane.f32.xlu0 %v2453_v59  ;;  %v3229_v60 = vpop.f32.mrf.mxu1 }
 0xead   : > { %v2455_v61 = vpop.xlane.xlu0 %2454 }
 0xeae   : > { %v2456_v62 = vmul.f32 0.03125, %v2455_v61 }
 0xeb0   : > { %v2457_v63 = vsub.f32 %v4691_v57, %v2456_v62 }
 0xeb2   : > { %v2458_v1 = vmul.f32 %v2457_v63, %v2457_v63 }
 0xeb4   : > { %v2459_v2 = vsel %vm1004_vm0, %v2458_v1, 0.0 }
 0xeb5   : > { %2460 = vadd.xlane.f32.xlu1 %v2459_v2 }
 0xf3e   : > { %v2461_v5 = vpop.xlane.xlu1 %2460 }
 0xf3f   : > { %v2462_v6 = vmul.f32 0.03125, %v2461_v5 }
 0xf41   : > { %v2463_v7 = vadd.f32 1e-06, %v2462_v6 }
 0xf43   : > { %3519 = vrsqrt.f32 %v2463_v7 }
 0xf50   : > { %v3520_v8 = vpop.eup %3519 }
 0xf51   : > { %v2465_v10 = vmul.f32 %v3520_v8, %v2457_v63 }
 0xf53   : > { %v2473_v12 = vmul.f32 %v3004_v9, %v2465_v10 }
 0xf55   : > { %v2481_v14 = vadd.f32 %v3005_v11, %v2473_v12 }
 0xf57   : > { %v2482_v15 = vpack.c.bf16 %v2481_v14, %v2481_v14 }
 0xf59   : > { %3235 = vmatmul.mubr.msk.bf16.vlgmr.msra.gmra.mxu0 %vm1004_vm0, %v2482_v15 }
0x1019   : > { %v2543_v24 = vpop.f32.mrf.mxu0 }
0x101a   : > { %v2544_v25 = vadd.f32 %v3006_v23, %v2543_v24 }
0x101b   : > { %v3236_v26 = vpop.f32.mrf.mxu0 }
0x101c   : > { %v2550_v27 = vmul.f32 0.044715, %v2544_v25  ;;  %v2549_v13 = vmul.f32 0.5, %v2544_v25 }
0x101d   : > { %v2546_v28 = vpop.f32.mrf.mxu0 }
0x101e   : > { %v2551_v29 = vmul.f32 %v2550_v27, %v2544_v25 }
0x101f   : > { %v3237_v30 = vpop.f32.mrf.mxu0 }
0x1020   : > { %v2552_v31 = vmul.f32 %v2551_v29, %v2544_v25 }
0x1022   : > { %v2553_v32 = vadd.f32 %v2552_v31, %v2544_v25 }
0x1024   : > { %v2554_v33 = vmul.f32 0.7978846, %v2553_v32 }
0x1026   : > { %3521 = vtanh.f32 %v2554_v33 }
0x1033   : > { %v3522_v34 = vpop.eup %3521 }
0x1034   : > { %v2556_v35 = vadd.f32 1.0, %v3522_v34 }
0x1036   : > { %v2557_v36 = vmul.f32 %v2556_v35, %v2549_v13 }
0x1038   : > { %v2558_v37 = vpack.c.bf16 %v2557_v36, %v2557_v36 }
0x103a   : > { %3255 = vmatmul.mubr.bf16.vlgmr.msra.gmra.mxu1 %v2558_v37 }
0x10fa   : > { %v2657_v38 = vpop.f32.mrf.mxu1 }
0x10fb   : > { %v2663_v40 = vadd.f32 %v2657_v38, %v4691_v57 }
0x10fc   : > { %v3256_v41 = vpop.f32.mrf.mxu1 }
0x10fd   : > { %v2671_v42 = vadd.f32 %v3018_v39, %v2663_v40 }
0x10fe   : > { %v2660_v43 = vpop.f32.mrf.mxu1 }
0x10ff   : > { %2672 = vst.msk [vmem:[%s992_s8] sm:$0xff] %vm1004_vm0, %v2671_v42 }
0x1100   : > { %v3257_v44 = vpop.f32.mrf.mxu1 }
0x1101   : > { %3904 = shalt.err (!%p3901_p10)
}
0x1102   : > { %s3905_s5 = scalar_lea.hbm %s4742_s3, 128  ;;  %s3909_s28 = scalar_lea.hbm %s4900_s22, 256 }
0x1103   : > { %p3906_p6 = scmp.ne.s32.totalorder %s4742_s3, %s3905_s5  ;;  %p3910_p7 = scmp.lt.s32.totalorder %s4742_s3, %s4900_s22 }
0x1104   : > { %p3911_p1 = scmp.lt.s32.totalorder %s3909_s28, %s3905_s5 }
0x1105   : > { %p3907_p12 = pnand %p3906_p6, %p4331_p4 }
0x1106   : > { %p3912_p13 = por %p3911_p1, %p3910_p7 }
0x1107   : > { %p3908_p5 = pneg %p3907_p12 }
0x1109   : > { %p3913_p2 = pnand %p3912_p13, %p3908_p5 }
0x110b   : > { %3916 = shalt.err (!%p3913_p2)
}
0x110c   : > { %3310 = dma.vmem_to_hbm [thread:$0]  (%p4331_p4), %s4744_s23, 128, %s4742_s3, %s2674_s30  }
0x110d PF: > { %s4901_s21 = sld [smem:[#allocation39_spill]]  ;;  %s2700_s8 = sand.u32 1, %s3983_s29  }
0x110e   : > { %s2701_s14 = scalar_lea.sflag [#allocation6], %s2700_s8 }
0x1113   : > { %p4902_p8 = scmp.ge.s32.totalorder %s4901_s21, 2 }
0x1115   : > { %p3357_p3 = pnand %p4902_p8, %p4338_p0 }
0x1117   : > { %p3358_p9 = pneg %p3357_p3 }
0x1119   : > { %3978 = dma.done.wait (%p3358_p9), %s2701_s14, 128  }
0x111a   : > { %3980 = vsyncadd (%p3358_p9), %s2701_s14, 4294967168  ;;  %s50_s3 = sadd.s32 1, %s4901_s21   ;;  %s4903_s25 = sld [smem:[#allocation38_spill]] }
0x111b   : > { %p47_p11 = scmp.ge.s32.totalorder %s50_s3, 4   ;;  %s4904_s6 = sld [smem:[#allocation41_spill]] }
0x111c   : > { %s4905_s23 = sld [smem:[#allocation40_spill]]  ;;  %s4906_s29 = smov %s3987_s2 }
0x111d   : > { %s4908_s30 = smov %s3999_s7 }
0x111e   :  { %49 = sbr.rel (!%p47_p11) target bundleno = 37 (0x25), region = 234 }
0x1120   : > { %s4907_s2 = smov %s4903_s25 }
0x1122   : > { %s4909_s7 = smov %s4905_s23 }
0x1123   :  { %2706 = vsyncpa [#allocation5], 1 }
0x1124   :  { %2708 = vsyncpa [#allocation5 + $0x1], 1 }
0x1125   :  { %2709 = vsyncpa [#allocation8], 1 }
0x1126   :  { %2711 = vsyncpa [#allocation8 + $0x1], 1 }
0x1127   :  { %2712 = vsyncpa [#allocation11], 1 }
0x1128   :  { %2713 = vsyncpa [#allocation14], 1 }
0x1129   :  { %2714 = vsyncpa [#allocation17], 1 }
0x112a   :  { %2715 = vsyncpa [#allocation20], 1 }
0x112b   :  { %2716 = vsyncpa [#allocation23], 1 }
0x112c   :  { %2717 = vsyncpa [#allocation26], 1 }
0x112d   :  { %2718 = vsyncpa [#allocation6], 1 }
0x112e   :  { %2720 = vsyncpa [#allocation6 + $0x1], 1 }

</bundles_post_ra>
